<compile_context>
chip_gen: v6e
topology: v6e:2x2x1
jax: 0.10.0
libtpu: 0.0.40
codegen_flags: <defaults>
</compile_context>

<pallas_src>
import jax
import jax.numpy as jnp
from jax import lax
from jax.experimental import pallas as pl
from jax.experimental.pallas import tpu as pltpu

FEAT_DIM = 32
HID_DIM = 16
CONV_COUT = 8
IMG_C, IMG_H, IMG_W = 1, 16, 16
OUT_LANES = 128

# Row offsets inside the packed small-weights slab (shape (200, 64), f32).
_ROW_FTN_W1 = 0      # (32, 32) in cols 0:32
_ROW_FTN_W2 = 32     # (32, 32) in cols 0:32
_ROW_DW1 = 64        # (64, 64) block-diag fused D first layer
_ROW_DW2 = 128       # (64, 4)  block-diag fused D second layer (cols 0:4)
_ROW_FC_B = 192      # (1, 32)
_ROW_FTN_B1 = 193    # (1, 32)
_ROW_FTN_B2 = 194    # (1, 32)
_ROW_D_B1 = 195      # (1, 64)
_ROW_D_B2 = 196      # (1, 4)
_WPACK_ROWS = 200


# ---------------------------------------------------------------------------
# One fused kernel for the whole forward pass.
# ---------------------------------------------------------------------------
def _fused_model_kernel(conv_ref,   # SMEM (80,): 72 conv weights + 8 conv biases
                        x_ref,      # VMEM (M, 256): all three branches, row-flattened images
                        fc_w_ref,   # VMEM (2048, 32)
                        w_ref,      # VMEM (200, 64): packed FTN / D weights + biases
                        out_ref,    # VMEM (M, 128): lane-dense output slab
                        flat_ref):  # VMEM scratch (M, 2048): conv output, NCHW-flatten order
    m, hw = x_ref.shape
    x = x_ref[...]

    # ---- build the 9 shifted images in-registers with XLU rolls + edge masks.
    col = lax.broadcasted_iota(jnp.int32, (m, hw), 1)
    xx = lax.bitwise_and(col, IMG_W - 1)          # pixel x  (col % 16)
    yy = lax.shift_right_logical(col, 4)          # pixel y  (col // 16)

    shifted = []
    for k in range(9):
        dy, dx = k // 3 - 1, k % 3 - 1
        off = dy * IMG_W + dx
        s = x if off == 0 else pltpu.roll(x, shift=(-off) % hw, axis=1)
        conds = []
        if dy == -1:
            conds.append(yy >= 1)
        if dy == 1:
            conds.append(yy <= IMG_H - 2)
        if dx == -1:
            conds.append(xx >= 1)
        if dx == 1:
            conds.append(xx <= IMG_W - 2)
        if conds:
            mask = conds[0]
            for cnd in conds[1:]:
                mask = jnp.logical_and(mask, cnd)
            s = jnp.where(mask, s, 0.0)
        shifted.append(s)

    # ---- 3x3 conv (pad=1, Cin=1) + ReLU as 9 VPU FMAs per channel; each
    # channel slab lands directly in NCHW-flatten order.
    for c in range(CONV_COUT):
        acc = shifted[0] * conv_ref[c * 9]
        for k in range(1, 9):
            acc = acc + shifted[k] * conv_ref[c * 9 + k]
        flat_ref[:, c * hw:(c + 1) * hw] = jnp.maximum(acc + conv_ref[CONV_COUT * 9 + c], 0.0)

    # ---- generator FC: one MXU matmul covering all three branches.
    fc_b = w_ref[_ROW_FC_B:_ROW_FC_B + 1, 0:FEAT_DIM]
    f_all = jnp.dot(flat_ref[...], fc_w_ref[...], preferred_element_type=jnp.float32)
    f_all = jnp.maximum(f_all + fc_b, 0.0)                         # (M, 32)

    # ---- FTN (.detach() is a forward no-op).
    ftn_w1 = w_ref[_ROW_FTN_W1:_ROW_FTN_W1 + FEAT_DIM, 0:FEAT_DIM]
    ftn_b1 = w_ref[_ROW_FTN_B1:_ROW_FTN_B1 + 1, 0:FEAT_DIM]
    ftn_w2 = w_ref[_ROW_FTN_W2:_ROW_FTN_W2 + FEAT_DIM, 0:FEAT_DIM]
    ftn_b2 = w_ref[_ROW_FTN_B2:_ROW_FTN_B2 + 1, 0:FEAT_DIM]
    h = jnp.maximum(jnp.dot(f_all, ftn_w1, preferred_element_type=jnp.float32) + ftn_b1, 0.0)
    g_all = jnp.dot(h, ftn_w2, preferred_element_type=jnp.float32) + ftn_b2   # (M, 32)

    # ---- D1|D2 on BOTH f_all and g_all with one pair of matmuls:
    # feat = [f | g] (M, 64); block-diagonal weights give the 4 probability
    # columns [D1(f), D2(f), D1(g), D2(g)] in one shot.
    d_w1 = w_ref[_ROW_DW1:_ROW_DW1 + 2 * FEAT_DIM, :]
    d_b1 = w_ref[_ROW_D_B1:_ROW_D_B1 + 1, :]
    d_w2 = w_ref[_ROW_DW2:_ROW_DW2 + 2 * FEAT_DIM, 0:4]
    d_b2 = w_ref[_ROW_D_B2:_ROW_D_B2 + 1, 0:4]
    feat = jnp.concatenate([f_all, g_all], axis=1)                 # (M, 64)
    hd = jnp.maximum(jnp.dot(feat, d_w1, preferred_element_type=jnp.float32) + d_b1, 0.0)
    logits = jnp.dot(hd, d_w2, preferred_element_type=jnp.float32) + d_b2     # (M, 4)
    probs = 1.0 / (1.0 + jnp.exp(-logits))                         # exact sigmoid

    # ---- single lane-dense output slab.
    out_ref[...] = jnp.zeros_like(out_ref)
    out_ref[:, 0:FEAT_DIM] = f_all
    out_ref[:, FEAT_DIM:2 * FEAT_DIM] = g_all
    out_ref[:, 2 * FEAT_DIM:2 * FEAT_DIM + 4] = probs


def _vspec(shape):
    zeros = (0,) * len(shape)
    return pl.BlockSpec(shape, lambda i, _z=zeros: _z)


# ---------------------------------------------------------------------------
# One-time parameter fusion (hoisted out of the per-call forward).
# ---------------------------------------------------------------------------
def prepare_fused_params(params):
    gen, ftn, d1, d2 = params["gen"], params["ftn"], params["d1"], params["d2"]
    f32 = jnp.float32

    # conv weights (72) + biases (8) -> one flat SMEM array.
    conv_wb = jnp.concatenate(
        [gen["conv_w"].reshape(-1), gen["conv_b"]]).astype(f32)            # (80,)

    fc_w = gen["fc_w"].astype(f32)                                         # (2048, 32)

    # Fuse D1|D2 (col 0 = D1, col 1 = D2), then block-diagonal over [f | g].
    w1f = jnp.concatenate([d1["w1"], d2["w1"]], axis=1).astype(f32)        # (32, 32)
    b1f = jnp.concatenate([d1["b1"], d2["b1"]]).astype(f32)                # (32,)
    zc = jnp.zeros((HID_DIM, 1), f32)
    w2f = jnp.concatenate(
        [jnp.concatenate([d1["w2"], zc], axis=1),
         jnp.concatenate([zc, d2["w2"]], axis=1)], axis=0).astype(f32)     # (32, 2)
    b2f = jnp.concatenate([d1["b2"], d2["b2"]]).astype(f32)                # (2,)

    z3232 = jnp.zeros((FEAT_DIM, FEAT_DIM), f32)
    z322 = jnp.zeros((FEAT_DIM, 2), f32)
    d_w1_blk = jnp.concatenate(
        [jnp.concatenate([w1f, z3232], axis=1),
         jnp.concatenate([z3232, w1f], axis=1)], axis=0)                   # (64, 64)
    d_w2_blk = jnp.concatenate(
        [jnp.concatenate([w2f, z322], axis=1),
         jnp.concatenate([z322, w2f], axis=1)], axis=0)                    # (64, 4)
    d_b1_blk = jnp.concatenate([b1f, b1f])                                 # (64,)
    d_b2_blk = jnp.concatenate([b2f, b2f])                                 # (4,)

    def pad64(a):
        a = jnp.asarray(a, f32)
        return jnp.pad(a, ((0, 0), (0, 64 - a.shape[1])))

    rows = [
        pad64(ftn["w1"]),                         # rows   0: 32
        pad64(ftn["w2"]),                         # rows  32: 64
        d_w1_blk,                                 # rows  64:128
        pad64(d_w2_blk),                          # rows 128:192
        pad64(gen["fc_b"].reshape(1, -1)),        # row  192
        pad64(ftn["b1"].reshape(1, -1)),          # row  193
        pad64(ftn["b2"].reshape(1, -1)),          # row  194
        d_b1_blk.reshape(1, -1),                  # row  195
        pad64(d_b2_blk.reshape(1, -1)),           # row  196
    ]
    wpack = jnp.concatenate(rows, axis=0).astype(f32)                      # (197, 64)
    wpack = jnp.pad(wpack, ((0, _WPACK_ROWS - wpack.shape[0]), (0, 0)))    # (200, 64)

    return {"conv_wb": conv_wb, "fc_w": fc_w, "wpack": wpack}


# ---------------------------------------------------------------------------
# Per-call forward: batch the three branches, one pallas_call, slice outputs.
# ---------------------------------------------------------------------------
def model_forward(fused, X_t, X_s, X_sp):
    N, C, H, W = X_t.shape
    assert C == IMG_C and H == IMG_H and W == IMG_W
    M = 3 * N
    HW = H * W

    # Only per-call host op: batch the three branches into one (M, 256) block.
    x_all = jnp.concatenate([X_t, X_s, X_sp], axis=0).reshape(M, HW).astype(jnp.float32)

    smem_spec = pl.BlockSpec(memory_space=pltpu.MemorySpace.SMEM)

    slab = pl.pallas_call(
        _fused_model_kernel,
        out_shape=jax.ShapeDtypeStruct((M, OUT_LANES), jnp.float32),
        grid=(1,),
        in_specs=[
            smem_spec,                      # conv weights + biases (scalars)
            _vspec((M, HW)),                # batched images
            _vspec(fused["fc_w"].shape),    # generator FC weight
            _vspec(fused["wpack"].shape),   # packed small weights
        ],
        out_specs=_vspec((M, OUT_LANES)),
        scratch_shapes=[pltpu.VMEM((M, CONV_COUT * HW), jnp.float32)],
        compiler_params=pltpu.CompilerParams(dimension_semantics=("arbitrary",)),
    )(fused["conv_wb"], x_all, fused["fc_w"], fused["wpack"])

    # Slice the lane-dense slab back into the module's ten outputs.
    f_all = slab[:, 0:FEAT_DIM]
    g_all = slab[:, FEAT_DIM:2 * FEAT_DIM]
    d_cols = slab[:, 2 * FEAT_DIM:2 * FEAT_DIM + 4]   # [D1(f), D2(f), D1(g), D2(g)]

    f_Xt, f_Xs, f_Xsp = f_all[:N], f_all[N:2 * N], f_all[2 * N:]
    g_f_Xs, g_f_Xsp = g_all[N:2 * N], g_all[2 * N:]
    D1_f, D2_f = d_cols[:, 0:1], d_cols[:, 1:2]
    D1_g, D2_g = d_cols[:, 2:3], d_cols[:, 3:4]

    D2_f_Xt = D2_f[:N]
    D2_f_Xs = D2_f[N:2 * N]
    D2_g_f_Xs = D2_g[N:2 * N]
    D1_f_Xt = D1_f[:N]
    D1_g_f_Xs = D1_g[N:2 * N]
    return (f_Xt, f_Xs, f_Xsp, g_f_Xs, g_f_Xsp,
            D2_f_Xt, D2_f_Xs, D2_g_f_Xs, D1_f_Xt, D1_g_f_Xs)


# ---------------------------------------------------------------------------
# Deterministic parameter initialization.
# ---------------------------------------------------------------------------
def init_params(key):
    ks = jax.random.split(key, 12)

    def w(k, shape, scale=0.05):
        return (scale * jax.random.normal(k, shape)).astype(jnp.float32)

    gen = {
        "conv_w": w(ks[0], (CONV_COUT, IMG_C, 3, 3)),
        "conv_b": jnp.zeros((CONV_COUT,), jnp.float32),
        "fc_w": w(ks[1], (CONV_COUT * IMG_H * IMG_W, FEAT_DIM)),
        "fc_b": jnp.zeros((FEAT_DIM,), jnp.float32),
    }
    ftn = {
        "w1": w(ks[2], (FEAT_DIM, FEAT_DIM)), "b1": jnp.zeros((FEAT_DIM,), jnp.float32),
        "w2": w(ks[3], (FEAT_DIM, FEAT_DIM)), "b2": jnp.zeros((FEAT_DIM,), jnp.float32),
    }

    def discr_params(k1, k2):
        return {
            "w1": w(k1, (FEAT_DIM, HID_DIM)), "b1": jnp.zeros((HID_DIM,), jnp.float32),
            "w2": w(k2, (HID_DIM, 1)), "b2": jnp.zeros((1,), jnp.float32),
        }

    return {
        "gen": gen,
        "ftn": ftn,
        "d1": discr_params(ks[4], ks[5]),
        "d2": discr_params(ks[6], ks[7]),
    }


if __name__ == "__main__":
    key = jax.random.PRNGKey(0)
    k_p, k_t, k_s, k_sp = jax.random.split(key, 4)
    params = init_params(k_p)
    fused = prepare_fused_params(params)   # one-time weight fusion (hoisted)

    shape = (2, IMG_C, IMG_H, IMG_W)       # NCHW, small test size
    X_t = jax.random.normal(k_t, shape, dtype=jnp.float32)
    X_s = jax.random.normal(k_s, shape, dtype=jnp.float32)
    X_sp = jax.random.normal(k_sp, shape, dtype=jnp.float32)

    fwd = jax.jit(model_forward)
    outs = fwd(fused, X_t, X_s, X_sp)
    outs = jax.block_until_ready(outs)

    # light sanity checks on shapes / values
    assert outs[0].shape == (2, FEAT_DIM)      # f_Xt
    assert outs[3].shape == (2, FEAT_DIM)      # g_f_Xs
    assert outs[5].shape == (2, 1)             # D2_f_Xt
    assert outs[9].shape == (2, 1)             # D1_g_f_Xs
    assert all(bool(jnp.all(jnp.isfinite(o))) for o in outs)
    assert all(bool(jnp.all((o >= 0.0) & (o <= 1.0))) for o in outs[5:])   # sigmoid range
    print("KERNEL_OK")
</pallas_src>

<mosaic_0001>
module attributes {stable_mosaic.version = 11 : i64} {
  func.func @_fused_model_kernel(%arg0: i32, %arg1: memref<80xf32, #tpu.memory_space<smem>>, %arg2: memref<6x256xf32, #tpu.memory_space<vmem>>, %arg3: memref<2048x32xf32, #tpu.memory_space<vmem>>, %arg4: memref<200x64xf32, #tpu.memory_space<vmem>>, %arg5: memref<6x128xf32, #tpu.memory_space<vmem>>, %arg6: memref<6x2048xf32, #tpu.memory_space<vmem>>) attributes {dimension_semantics = [#tpu.dimension_semantics<arbitrary>], iteration_bounds = array<i64: 1>, scalar_prefetch = 0 : i64, scratch_operands = 1 : i64, tpu.core_type = #tpu.core_type<tc>, window_params = [{transform_indices = @transform_0, window_bounds = array<i64: 80>}, {pipeline_mode = #tpu.pipeline_mode<synchronous>, transform_indices = @transform_1, window_bounds = array<i64: 6, 256>}, {pipeline_mode = #tpu.pipeline_mode<synchronous>, transform_indices = @transform_2, window_bounds = array<i64: 2048, 32>}, {pipeline_mode = #tpu.pipeline_mode<synchronous>, transform_indices = @transform_3, window_bounds = array<i64: 200, 64>}, {pipeline_mode = #tpu.pipeline_mode<synchronous>, transform_indices = @transform_4, window_bounds = array<i64: 6, 128>}]} {
    %c0 = arith.constant 0 : index
    %c0_0 = arith.constant 0 : index
    %0 = vector.load %arg2[%c0, %c0_0] : memref<6x256xf32, #tpu.memory_space<vmem>>, vector<6x256xf32>
    %1 = tpu.iota {dimensions = array<i32: 1>} : vector<6x256xi32>
    %c15_i32 = arith.constant 15 : i32
    %2 = vector.broadcast %c15_i32 : i32 to vector<6x256xi32>
    %3 = arith.andi %1, %2 : vector<6x256xi32>
    %c4_i32 = arith.constant 4 : i32
    %4 = vector.broadcast %c4_i32 : i32 to vector<6x256xi32>
    %5 = arith.shrui %1, %4 : vector<6x256xi32>
    %c17_i32 = arith.constant 17 : i32
    %6 = tpu.dynamic_rotate %0 by %c17_i32 dim 1 : vector<6x256xf32>, i32 -> vector<6x256xf32>
    %c1_i32 = arith.constant 1 : i32
    %7 = vector.broadcast %c1_i32 : i32 to vector<6x256xi32>
    %8 = arith.cmpi sge, %5, %7 : vector<6x256xi32>
    %c1_i32_1 = arith.constant 1 : i32
    %9 = vector.broadcast %c1_i32_1 : i32 to vector<6x256xi32>
    %10 = arith.cmpi sge, %3, %9 : vector<6x256xi32>
    %11 = arith.andi %8, %10 : vector<6x256xi1>
    %cst = arith.constant 0.000000e+00 : f32
    %12 = vector.broadcast %cst : f32 to vector<6x256xf32>
    %13 = arith.select %11, %6, %12 : vector<6x256xi1>, vector<6x256xf32>
    %c16_i32 = arith.constant 16 : i32
    %14 = tpu.dynamic_rotate %0 by %c16_i32 dim 1 : vector<6x256xf32>, i32 -> vector<6x256xf32>
    %c1_i32_2 = arith.constant 1 : i32
    %15 = vector.broadcast %c1_i32_2 : i32 to vector<6x256xi32>
    %16 = arith.cmpi sge, %5, %15 : vector<6x256xi32>
    %cst_3 = arith.constant 0.000000e+00 : f32
    %17 = vector.broadcast %cst_3 : f32 to vector<6x256xf32>
    %18 = arith.select %16, %14, %17 : vector<6x256xi1>, vector<6x256xf32>
    %c15_i32_4 = arith.constant 15 : i32
    %19 = tpu.dynamic_rotate %0 by %c15_i32_4 dim 1 : vector<6x256xf32>, i32 -> vector<6x256xf32>
    %c1_i32_5 = arith.constant 1 : i32
    %20 = vector.broadcast %c1_i32_5 : i32 to vector<6x256xi32>
    %21 = arith.cmpi sge, %5, %20 : vector<6x256xi32>
    %c14_i32 = arith.constant 14 : i32
    %22 = vector.broadcast %c14_i32 : i32 to vector<6x256xi32>
    %23 = arith.cmpi sle, %3, %22 : vector<6x256xi32>
    %24 = arith.andi %21, %23 : vector<6x256xi1>
    %cst_6 = arith.constant 0.000000e+00 : f32
    %25 = vector.broadcast %cst_6 : f32 to vector<6x256xf32>
    %26 = arith.select %24, %19, %25 : vector<6x256xi1>, vector<6x256xf32>
    %c1_i32_7 = arith.constant 1 : i32
    %27 = tpu.dynamic_rotate %0 by %c1_i32_7 dim 1 : vector<6x256xf32>, i32 -> vector<6x256xf32>
    %c1_i32_8 = arith.constant 1 : i32
    %28 = vector.broadcast %c1_i32_8 : i32 to vector<6x256xi32>
    %29 = arith.cmpi sge, %3, %28 : vector<6x256xi32>
    %cst_9 = arith.constant 0.000000e+00 : f32
    %30 = vector.broadcast %cst_9 : f32 to vector<6x256xf32>
    %31 = arith.select %29, %27, %30 : vector<6x256xi1>, vector<6x256xf32>
    %c255_i32 = arith.constant 255 : i32
    %32 = tpu.dynamic_rotate %0 by %c255_i32 dim 1 : vector<6x256xf32>, i32 -> vector<6x256xf32>
    %c14_i32_10 = arith.constant 14 : i32
    %33 = vector.broadcast %c14_i32_10 : i32 to vector<6x256xi32>
    %34 = arith.cmpi sle, %3, %33 : vector<6x256xi32>
    %cst_11 = arith.constant 0.000000e+00 : f32
    %35 = vector.broadcast %cst_11 : f32 to vector<6x256xf32>
    %36 = arith.select %34, %32, %35 : vector<6x256xi1>, vector<6x256xf32>
    %c241_i32 = arith.constant 241 : i32
    %37 = tpu.dynamic_rotate %0 by %c241_i32 dim 1 : vector<6x256xf32>, i32 -> vector<6x256xf32>
    %c14_i32_12 = arith.constant 14 : i32
    %38 = vector.broadcast %c14_i32_12 : i32 to vector<6x256xi32>
    %39 = arith.cmpi sle, %5, %38 : vector<6x256xi32>
    %c1_i32_13 = arith.constant 1 : i32
    %40 = vector.broadcast %c1_i32_13 : i32 to vector<6x256xi32>
    %41 = arith.cmpi sge, %3, %40 : vector<6x256xi32>
    %42 = arith.andi %39, %41 : vector<6x256xi1>
    %cst_14 = arith.constant 0.000000e+00 : f32
    %43 = vector.broadcast %cst_14 : f32 to vector<6x256xf32>
    %44 = arith.select %42, %37, %43 : vector<6x256xi1>, vector<6x256xf32>
    %c240_i32 = arith.constant 240 : i32
    %45 = tpu.dynamic_rotate %0 by %c240_i32 dim 1 : vector<6x256xf32>, i32 -> vector<6x256xf32>
    %c14_i32_15 = arith.constant 14 : i32
    %46 = vector.broadcast %c14_i32_15 : i32 to vector<6x256xi32>
    %47 = arith.cmpi sle, %5, %46 : vector<6x256xi32>
    %cst_16 = arith.constant 0.000000e+00 : f32
    %48 = vector.broadcast %cst_16 : f32 to vector<6x256xf32>
    %49 = arith.select %47, %45, %48 : vector<6x256xi1>, vector<6x256xf32>
    %c239_i32 = arith.constant 239 : i32
    %50 = tpu.dynamic_rotate %0 by %c239_i32 dim 1 : vector<6x256xf32>, i32 -> vector<6x256xf32>
    %c14_i32_17 = arith.constant 14 : i32
    %51 = vector.broadcast %c14_i32_17 : i32 to vector<6x256xi32>
    %52 = arith.cmpi sle, %5, %51 : vector<6x256xi32>
    %c14_i32_18 = arith.constant 14 : i32
    %53 = vector.broadcast %c14_i32_18 : i32 to vector<6x256xi32>
    %54 = arith.cmpi sle, %3, %53 : vector<6x256xi32>
    %55 = arith.andi %52, %54 : vector<6x256xi1>
    %cst_19 = arith.constant 0.000000e+00 : f32
    %56 = vector.broadcast %cst_19 : f32 to vector<6x256xf32>
    %57 = arith.select %55, %50, %56 : vector<6x256xi1>, vector<6x256xf32>
    %c0_20 = arith.constant 0 : index
    %58 = memref.load %arg1[%c0_20] : memref<80xf32, #tpu.memory_space<smem>>
    %59 = vector.broadcast %58 : f32 to vector<6x256xf32>
    %60 = arith.mulf %13, %59 : vector<6x256xf32>
    %c1 = arith.constant 1 : index
    %61 = memref.load %arg1[%c1] : memref<80xf32, #tpu.memory_space<smem>>
    %62 = vector.broadcast %61 : f32 to vector<6x256xf32>
    %63 = arith.mulf %18, %62 : vector<6x256xf32>
    %64 = arith.addf %60, %63 : vector<6x256xf32>
    %c2 = arith.constant 2 : index
    %65 = memref.load %arg1[%c2] : memref<80xf32, #tpu.memory_space<smem>>
    %66 = vector.broadcast %65 : f32 to vector<6x256xf32>
    %67 = arith.mulf %26, %66 : vector<6x256xf32>
    %68 = arith.addf %64, %67 : vector<6x256xf32>
    %c3 = arith.constant 3 : index
    %69 = memref.load %arg1[%c3] : memref<80xf32, #tpu.memory_space<smem>>
    %70 = vector.broadcast %69 : f32 to vector<6x256xf32>
    %71 = arith.mulf %31, %70 : vector<6x256xf32>
    %72 = arith.addf %68, %71 : vector<6x256xf32>
    %c4 = arith.constant 4 : index
    %73 = memref.load %arg1[%c4] : memref<80xf32, #tpu.memory_space<smem>>
    %74 = vector.broadcast %73 : f32 to vector<6x256xf32>
    %75 = arith.mulf %0, %74 : vector<6x256xf32>
    %76 = arith.addf %72, %75 : vector<6x256xf32>
    %c5 = arith.constant 5 : index
    %77 = memref.load %arg1[%c5] : memref<80xf32, #tpu.memory_space<smem>>
    %78 = vector.broadcast %77 : f32 to vector<6x256xf32>
    %79 = arith.mulf %36, %78 : vector<6x256xf32>
    %80 = arith.addf %76, %79 : vector<6x256xf32>
    %c6 = arith.constant 6 : index
    %81 = memref.load %arg1[%c6] : memref<80xf32, #tpu.memory_space<smem>>
    %82 = vector.broadcast %81 : f32 to vector<6x256xf32>
    %83 = arith.mulf %44, %82 : vector<6x256xf32>
    %84 = arith.addf %80, %83 : vector<6x256xf32>
    %c7 = arith.constant 7 : index
    %85 = memref.load %arg1[%c7] : memref<80xf32, #tpu.memory_space<smem>>
    %86 = vector.broadcast %85 : f32 to vector<6x256xf32>
    %87 = arith.mulf %49, %86 : vector<6x256xf32>
    %88 = arith.addf %84, %87 : vector<6x256xf32>
    %c8 = arith.constant 8 : index
    %89 = memref.load %arg1[%c8] : memref<80xf32, #tpu.memory_space<smem>>
    %90 = vector.broadcast %89 : f32 to vector<6x256xf32>
    %91 = arith.mulf %57, %90 : vector<6x256xf32>
    %92 = arith.addf %88, %91 : vector<6x256xf32>
    %c72 = arith.constant 72 : index
    %93 = memref.load %arg1[%c72] : memref<80xf32, #tpu.memory_space<smem>>
    %94 = vector.broadcast %93 : f32 to vector<6x256xf32>
    %95 = arith.addf %92, %94 : vector<6x256xf32>
    %cst_21 = arith.constant 0.000000e+00 : f32
    %96 = vector.broadcast %cst_21 : f32 to vector<6x256xf32>
    %97 = arith.maximumf %95, %96 : vector<6x256xf32>
    %c0_22 = arith.constant 0 : index
    %c0_23 = arith.constant 0 : index
    %98 = vector.load %arg6[%c0_22, %c0_23] : memref<6x2048xf32, #tpu.memory_space<vmem>>, vector<6x256xf32>
    tpu.vector_store %arg6[%c0_22, %c0_23], %97 {strides = array<i32>} : memref<6x2048xf32, #tpu.memory_space<vmem>>, vector<6x256xf32>,
    %c9 = arith.constant 9 : index
    %99 = memref.load %arg1[%c9] : memref<80xf32, #tpu.memory_space<smem>>
    %100 = vector.broadcast %99 : f32 to vector<6x256xf32>
    %101 = arith.mulf %13, %100 : vector<6x256xf32>
    %c10 = arith.constant 10 : index
    %102 = memref.load %arg1[%c10] : memref<80xf32, #tpu.memory_space<smem>>
    %103 = vector.broadcast %102 : f32 to vector<6x256xf32>
    %104 = arith.mulf %18, %103 : vector<6x256xf32>
    %105 = arith.addf %101, %104 : vector<6x256xf32>
    %c11 = arith.constant 11 : index
    %106 = memref.load %arg1[%c11] : memref<80xf32, #tpu.memory_space<smem>>
    %107 = vector.broadcast %106 : f32 to vector<6x256xf32>
    %108 = arith.mulf %26, %107 : vector<6x256xf32>
    %109 = arith.addf %105, %108 : vector<6x256xf32>
    %c12 = arith.constant 12 : index
    %110 = memref.load %arg1[%c12] : memref<80xf32, #tpu.memory_space<smem>>
    %111 = vector.broadcast %110 : f32 to vector<6x256xf32>
    %112 = arith.mulf %31, %111 : vector<6x256xf32>
    %113 = arith.addf %109, %112 : vector<6x256xf32>
    %c13 = arith.constant 13 : index
    %114 = memref.load %arg1[%c13] : memref<80xf32, #tpu.memory_space<smem>>
    %115 = vector.broadcast %114 : f32 to vector<6x256xf32>
    %116 = arith.mulf %0, %115 : vector<6x256xf32>
    %117 = arith.addf %113, %116 : vector<6x256xf32>
    %c14 = arith.constant 14 : index
    %118 = memref.load %arg1[%c14] : memref<80xf32, #tpu.memory_space<smem>>
    %119 = vector.broadcast %118 : f32 to vector<6x256xf32>
    %120 = arith.mulf %36, %119 : vector<6x256xf32>
    %121 = arith.addf %117, %120 : vector<6x256xf32>
    %c15 = arith.constant 15 : index
    %122 = memref.load %arg1[%c15] : memref<80xf32, #tpu.memory_space<smem>>
    %123 = vector.broadcast %122 : f32 to vector<6x256xf32>
    %124 = arith.mulf %44, %123 : vector<6x256xf32>
    %125 = arith.addf %121, %124 : vector<6x256xf32>
    %c16 = arith.constant 16 : index
    %126 = memref.load %arg1[%c16] : memref<80xf32, #tpu.memory_space<smem>>
    %127 = vector.broadcast %126 : f32 to vector<6x256xf32>
    %128 = arith.mulf %49, %127 : vector<6x256xf32>
    %129 = arith.addf %125, %128 : vector<6x256xf32>
    %c17 = arith.constant 17 : index
    %130 = memref.load %arg1[%c17] : memref<80xf32, #tpu.memory_space<smem>>
    %131 = vector.broadcast %130 : f32 to vector<6x256xf32>
    %132 = arith.mulf %57, %131 : vector<6x256xf32>
    %133 = arith.addf %129, %132 : vector<6x256xf32>
    %c73 = arith.constant 73 : index
    %134 = memref.load %arg1[%c73] : memref<80xf32, #tpu.memory_space<smem>>
    %135 = vector.broadcast %134 : f32 to vector<6x256xf32>
    %136 = arith.addf %133, %135 : vector<6x256xf32>
    %cst_24 = arith.constant 0.000000e+00 : f32
    %137 = vector.broadcast %cst_24 : f32 to vector<6x256xf32>
    %138 = arith.maximumf %136, %137 : vector<6x256xf32>
    %c0_25 = arith.constant 0 : index
    %c256 = arith.constant 256 : index
    %139 = vector.load %arg6[%c0_25, %c256] : memref<6x2048xf32, #tpu.memory_space<vmem>>, vector<6x256xf32>
    tpu.vector_store %arg6[%c0_25, %c256], %138 {strides = array<i32>} : memref<6x2048xf32, #tpu.memory_space<vmem>>, vector<6x256xf32>,
    %c18 = arith.constant 18 : index
    %140 = memref.load %arg1[%c18] : memref<80xf32, #tpu.memory_space<smem>>
    %141 = vector.broadcast %140 : f32 to vector<6x256xf32>
    %142 = arith.mulf %13, %141 : vector<6x256xf32>
    %c19 = arith.constant 19 : index
    %143 = memref.load %arg1[%c19] : memref<80xf32, #tpu.memory_space<smem>>
    %144 = vector.broadcast %143 : f32 to vector<6x256xf32>
    %145 = arith.mulf %18, %144 : vector<6x256xf32>
    %146 = arith.addf %142, %145 : vector<6x256xf32>
    %c20 = arith.constant 20 : index
    %147 = memref.load %arg1[%c20] : memref<80xf32, #tpu.memory_space<smem>>
    %148 = vector.broadcast %147 : f32 to vector<6x256xf32>
    %149 = arith.mulf %26, %148 : vector<6x256xf32>
    %150 = arith.addf %146, %149 : vector<6x256xf32>
    %c21 = arith.constant 21 : index
    %151 = memref.load %arg1[%c21] : memref<80xf32, #tpu.memory_space<smem>>
    %152 = vector.broadcast %151 : f32 to vector<6x256xf32>
    %153 = arith.mulf %31, %152 : vector<6x256xf32>
    %154 = arith.addf %150, %153 : vector<6x256xf32>
    %c22 = arith.constant 22 : index
    %155 = memref.load %arg1[%c22] : memref<80xf32, #tpu.memory_space<smem>>
    %156 = vector.broadcast %155 : f32 to vector<6x256xf32>
    %157 = arith.mulf %0, %156 : vector<6x256xf32>
    %158 = arith.addf %154, %157 : vector<6x256xf32>
    %c23 = arith.constant 23 : index
    %159 = memref.load %arg1[%c23] : memref<80xf32, #tpu.memory_space<smem>>
    %160 = vector.broadcast %159 : f32 to vector<6x256xf32>
    %161 = arith.mulf %36, %160 : vector<6x256xf32>
    %162 = arith.addf %158, %161 : vector<6x256xf32>
    %c24 = arith.constant 24 : index
    %163 = memref.load %arg1[%c24] : memref<80xf32, #tpu.memory_space<smem>>
    %164 = vector.broadcast %163 : f32 to vector<6x256xf32>
    %165 = arith.mulf %44, %164 : vector<6x256xf32>
    %166 = arith.addf %162, %165 : vector<6x256xf32>
    %c25 = arith.constant 25 : index
    %167 = memref.load %arg1[%c25] : memref<80xf32, #tpu.memory_space<smem>>
    %168 = vector.broadcast %167 : f32 to vector<6x256xf32>
    %169 = arith.mulf %49, %168 : vector<6x256xf32>
    %170 = arith.addf %166, %169 : vector<6x256xf32>
    %c26 = arith.constant 26 : index
    %171 = memref.load %arg1[%c26] : memref<80xf32, #tpu.memory_space<smem>>
    %172 = vector.broadcast %171 : f32 to vector<6x256xf32>
    %173 = arith.mulf %57, %172 : vector<6x256xf32>
    %174 = arith.addf %170, %173 : vector<6x256xf32>
    %c74 = arith.constant 74 : index
    %175 = memref.load %arg1[%c74] : memref<80xf32, #tpu.memory_space<smem>>
    %176 = vector.broadcast %175 : f32 to vector<6x256xf32>
    %177 = arith.addf %174, %176 : vector<6x256xf32>
    %cst_26 = arith.constant 0.000000e+00 : f32
    %178 = vector.broadcast %cst_26 : f32 to vector<6x256xf32>
    %179 = arith.maximumf %177, %178 : vector<6x256xf32>
    %c0_27 = arith.constant 0 : index
    %c512 = arith.constant 512 : index
    %180 = vector.load %arg6[%c0_27, %c512] : memref<6x2048xf32, #tpu.memory_space<vmem>>, vector<6x256xf32>
    tpu.vector_store %arg6[%c0_27, %c512], %179 {strides = array<i32>} : memref<6x2048xf32, #tpu.memory_space<vmem>>, vector<6x256xf32>,
    %c27 = arith.constant 27 : index
    %181 = memref.load %arg1[%c27] : memref<80xf32, #tpu.memory_space<smem>>
    %182 = vector.broadcast %181 : f32 to vector<6x256xf32>
    %183 = arith.mulf %13, %182 : vector<6x256xf32>
    %c28 = arith.constant 28 : index
    %184 = memref.load %arg1[%c28] : memref<80xf32, #tpu.memory_space<smem>>
    %185 = vector.broadcast %184 : f32 to vector<6x256xf32>
    %186 = arith.mulf %18, %185 : vector<6x256xf32>
    %187 = arith.addf %183, %186 : vector<6x256xf32>
    %c29 = arith.constant 29 : index
    %188 = memref.load %arg1[%c29] : memref<80xf32, #tpu.memory_space<smem>>
    %189 = vector.broadcast %188 : f32 to vector<6x256xf32>
    %190 = arith.mulf %26, %189 : vector<6x256xf32>
    %191 = arith.addf %187, %190 : vector<6x256xf32>
    %c30 = arith.constant 30 : index
    %192 = memref.load %arg1[%c30] : memref<80xf32, #tpu.memory_space<smem>>
    %193 = vector.broadcast %192 : f32 to vector<6x256xf32>
    %194 = arith.mulf %31, %193 : vector<6x256xf32>
    %195 = arith.addf %191, %194 : vector<6x256xf32>
    %c31 = arith.constant 31 : index
    %196 = memref.load %arg1[%c31] : memref<80xf32, #tpu.memory_space<smem>>
    %197 = vector.broadcast %196 : f32 to vector<6x256xf32>
    %198 = arith.mulf %0, %197 : vector<6x256xf32>
    %199 = arith.addf %195, %198 : vector<6x256xf32>
    %c32 = arith.constant 32 : index
    %200 = memref.load %arg1[%c32] : memref<80xf32, #tpu.memory_space<smem>>
    %201 = vector.broadcast %200 : f32 to vector<6x256xf32>
    %202 = arith.mulf %36, %201 : vector<6x256xf32>
    %203 = arith.addf %199, %202 : vector<6x256xf32>
    %c33 = arith.constant 33 : index
    %204 = memref.load %arg1[%c33] : memref<80xf32, #tpu.memory_space<smem>>
    %205 = vector.broadcast %204 : f32 to vector<6x256xf32>
    %206 = arith.mulf %44, %205 : vector<6x256xf32>
    %207 = arith.addf %203, %206 : vector<6x256xf32>
    %c34 = arith.constant 34 : index
    %208 = memref.load %arg1[%c34] : memref<80xf32, #tpu.memory_space<smem>>
    %209 = vector.broadcast %208 : f32 to vector<6x256xf32>
    %210 = arith.mulf %49, %209 : vector<6x256xf32>
    %211 = arith.addf %207, %210 : vector<6x256xf32>
    %c35 = arith.constant 35 : index
    %212 = memref.load %arg1[%c35] : memref<80xf32, #tpu.memory_space<smem>>
    %213 = vector.broadcast %212 : f32 to vector<6x256xf32>
    %214 = arith.mulf %57, %213 : vector<6x256xf32>
    %215 = arith.addf %211, %214 : vector<6x256xf32>
    %c75 = arith.constant 75 : index
    %216 = memref.load %arg1[%c75] : memref<80xf32, #tpu.memory_space<smem>>
    %217 = vector.broadcast %216 : f32 to vector<6x256xf32>
    %218 = arith.addf %215, %217 : vector<6x256xf32>
    %cst_28 = arith.constant 0.000000e+00 : f32
    %219 = vector.broadcast %cst_28 : f32 to vector<6x256xf32>
    %220 = arith.maximumf %218, %219 : vector<6x256xf32>
    %c0_29 = arith.constant 0 : index
    %c768 = arith.constant 768 : index
    %221 = vector.load %arg6[%c0_29, %c768] : memref<6x2048xf32, #tpu.memory_space<vmem>>, vector<6x256xf32>
    tpu.vector_store %arg6[%c0_29, %c768], %220 {strides = array<i32>} : memref<6x2048xf32, #tpu.memory_space<vmem>>, vector<6x256xf32>,
    %c36 = arith.constant 36 : index
    %222 = memref.load %arg1[%c36] : memref<80xf32, #tpu.memory_space<smem>>
    %223 = vector.broadcast %222 : f32 to vector<6x256xf32>
    %224 = arith.mulf %13, %223 : vector<6x256xf32>
    %c37 = arith.constant 37 : index
    %225 = memref.load %arg1[%c37] : memref<80xf32, #tpu.memory_space<smem>>
    %226 = vector.broadcast %225 : f32 to vector<6x256xf32>
    %227 = arith.mulf %18, %226 : vector<6x256xf32>
    %228 = arith.addf %224, %227 : vector<6x256xf32>
    %c38 = arith.constant 38 : index
    %229 = memref.load %arg1[%c38] : memref<80xf32, #tpu.memory_space<smem>>
    %230 = vector.broadcast %229 : f32 to vector<6x256xf32>
    %231 = arith.mulf %26, %230 : vector<6x256xf32>
    %232 = arith.addf %228, %231 : vector<6x256xf32>
    %c39 = arith.constant 39 : index
    %233 = memref.load %arg1[%c39] : memref<80xf32, #tpu.memory_space<smem>>
    %234 = vector.broadcast %233 : f32 to vector<6x256xf32>
    %235 = arith.mulf %31, %234 : vector<6x256xf32>
    %236 = arith.addf %232, %235 : vector<6x256xf32>
    %c40 = arith.constant 40 : index
    %237 = memref.load %arg1[%c40] : memref<80xf32, #tpu.memory_space<smem>>
    %238 = vector.broadcast %237 : f32 to vector<6x256xf32>
    %239 = arith.mulf %0, %238 : vector<6x256xf32>
    %240 = arith.addf %236, %239 : vector<6x256xf32>
    %c41 = arith.constant 41 : index
    %241 = memref.load %arg1[%c41] : memref<80xf32, #tpu.memory_space<smem>>
    %242 = vector.broadcast %241 : f32 to vector<6x256xf32>
    %243 = arith.mulf %36, %242 : vector<6x256xf32>
    %244 = arith.addf %240, %243 : vector<6x256xf32>
    %c42 = arith.constant 42 : index
    %245 = memref.load %arg1[%c42] : memref<80xf32, #tpu.memory_space<smem>>
    %246 = vector.broadcast %245 : f32 to vector<6x256xf32>
    %247 = arith.mulf %44, %246 : vector<6x256xf32>
    %248 = arith.addf %244, %247 : vector<6x256xf32>
    %c43 = arith.constant 43 : index
    %249 = memref.load %arg1[%c43] : memref<80xf32, #tpu.memory_space<smem>>
    %250 = vector.broadcast %249 : f32 to vector<6x256xf32>
    %251 = arith.mulf %49, %250 : vector<6x256xf32>
    %252 = arith.addf %248, %251 : vector<6x256xf32>
    %c44 = arith.constant 44 : index
    %253 = memref.load %arg1[%c44] : memref<80xf32, #tpu.memory_space<smem>>
    %254 = vector.broadcast %253 : f32 to vector<6x256xf32>
    %255 = arith.mulf %57, %254 : vector<6x256xf32>
    %256 = arith.addf %252, %255 : vector<6x256xf32>
    %c76 = arith.constant 76 : index
    %257 = memref.load %arg1[%c76] : memref<80xf32, #tpu.memory_space<smem>>
    %258 = vector.broadcast %257 : f32 to vector<6x256xf32>
    %259 = arith.addf %256, %258 : vector<6x256xf32>
    %cst_30 = arith.constant 0.000000e+00 : f32
    %260 = vector.broadcast %cst_30 : f32 to vector<6x256xf32>
    %261 = arith.maximumf %259, %260 : vector<6x256xf32>
    %c0_31 = arith.constant 0 : index
    %c1024 = arith.constant 1024 : index
    %262 = vector.load %arg6[%c0_31, %c1024] : memref<6x2048xf32, #tpu.memory_space<vmem>>, vector<6x256xf32>
    tpu.vector_store %arg6[%c0_31, %c1024], %261 {strides = array<i32>} : memref<6x2048xf32, #tpu.memory_space<vmem>>, vector<6x256xf32>,
    %c45 = arith.constant 45 : index
    %263 = memref.load %arg1[%c45] : memref<80xf32, #tpu.memory_space<smem>>
    %264 = vector.broadcast %263 : f32 to vector<6x256xf32>
    %265 = arith.mulf %13, %264 : vector<6x256xf32>
    %c46 = arith.constant 46 : index
    %266 = memref.load %arg1[%c46] : memref<80xf32, #tpu.memory_space<smem>>
    %267 = vector.broadcast %266 : f32 to vector<6x256xf32>
    %268 = arith.mulf %18, %267 : vector<6x256xf32>
    %269 = arith.addf %265, %268 : vector<6x256xf32>
    %c47 = arith.constant 47 : index
    %270 = memref.load %arg1[%c47] : memref<80xf32, #tpu.memory_space<smem>>
    %271 = vector.broadcast %270 : f32 to vector<6x256xf32>
    %272 = arith.mulf %26, %271 : vector<6x256xf32>
    %273 = arith.addf %269, %272 : vector<6x256xf32>
    %c48 = arith.constant 48 : index
    %274 = memref.load %arg1[%c48] : memref<80xf32, #tpu.memory_space<smem>>
    %275 = vector.broadcast %274 : f32 to vector<6x256xf32>
    %276 = arith.mulf %31, %275 : vector<6x256xf32>
    %277 = arith.addf %273, %276 : vector<6x256xf32>
    %c49 = arith.constant 49 : index
    %278 = memref.load %arg1[%c49] : memref<80xf32, #tpu.memory_space<smem>>
    %279 = vector.broadcast %278 : f32 to vector<6x256xf32>
    %280 = arith.mulf %0, %279 : vector<6x256xf32>
    %281 = arith.addf %277, %280 : vector<6x256xf32>
    %c50 = arith.constant 50 : index
    %282 = memref.load %arg1[%c50] : memref<80xf32, #tpu.memory_space<smem>>
    %283 = vector.broadcast %282 : f32 to vector<6x256xf32>
    %284 = arith.mulf %36, %283 : vector<6x256xf32>
    %285 = arith.addf %281, %284 : vector<6x256xf32>
    %c51 = arith.constant 51 : index
    %286 = memref.load %arg1[%c51] : memref<80xf32, #tpu.memory_space<smem>>
    %287 = vector.broadcast %286 : f32 to vector<6x256xf32>
    %288 = arith.mulf %44, %287 : vector<6x256xf32>
    %289 = arith.addf %285, %288 : vector<6x256xf32>
    %c52 = arith.constant 52 : index
    %290 = memref.load %arg1[%c52] : memref<80xf32, #tpu.memory_space<smem>>
    %291 = vector.broadcast %290 : f32 to vector<6x256xf32>
    %292 = arith.mulf %49, %291 : vector<6x256xf32>
    %293 = arith.addf %289, %292 : vector<6x256xf32>
    %c53 = arith.constant 53 : index
    %294 = memref.load %arg1[%c53] : memref<80xf32, #tpu.memory_space<smem>>
    %295 = vector.broadcast %294 : f32 to vector<6x256xf32>
    %296 = arith.mulf %57, %295 : vector<6x256xf32>
    %297 = arith.addf %293, %296 : vector<6x256xf32>
    %c77 = arith.constant 77 : index
    %298 = memref.load %arg1[%c77] : memref<80xf32, #tpu.memory_space<smem>>
    %299 = vector.broadcast %298 : f32 to vector<6x256xf32>
    %300 = arith.addf %297, %299 : vector<6x256xf32>
    %cst_32 = arith.constant 0.000000e+00 : f32
    %301 = vector.broadcast %cst_32 : f32 to vector<6x256xf32>
    %302 = arith.maximumf %300, %301 : vector<6x256xf32>
    %c0_33 = arith.constant 0 : index
    %c1280 = arith.constant 1280 : index
    %303 = vector.load %arg6[%c0_33, %c1280] : memref<6x2048xf32, #tpu.memory_space<vmem>>, vector<6x256xf32>
    tpu.vector_store %arg6[%c0_33, %c1280], %302 {strides = array<i32>} : memref<6x2048xf32, #tpu.memory_space<vmem>>, vector<6x256xf32>,
    %c54 = arith.constant 54 : index
    %304 = memref.load %arg1[%c54] : memref<80xf32, #tpu.memory_space<smem>>
    %305 = vector.broadcast %304 : f32 to vector<6x256xf32>
    %306 = arith.mulf %13, %305 : vector<6x256xf32>
    %c55 = arith.constant 55 : index
    %307 = memref.load %arg1[%c55] : memref<80xf32, #tpu.memory_space<smem>>
    %308 = vector.broadcast %307 : f32 to vector<6x256xf32>
    %309 = arith.mulf %18, %308 : vector<6x256xf32>
    %310 = arith.addf %306, %309 : vector<6x256xf32>
    %c56 = arith.constant 56 : index
    %311 = memref.load %arg1[%c56] : memref<80xf32, #tpu.memory_space<smem>>
    %312 = vector.broadcast %311 : f32 to vector<6x256xf32>
    %313 = arith.mulf %26, %312 : vector<6x256xf32>
    %314 = arith.addf %310, %313 : vector<6x256xf32>
    %c57 = arith.constant 57 : index
    %315 = memref.load %arg1[%c57] : memref<80xf32, #tpu.memory_space<smem>>
    %316 = vector.broadcast %315 : f32 to vector<6x256xf32>
    %317 = arith.mulf %31, %316 : vector<6x256xf32>
    %318 = arith.addf %314, %317 : vector<6x256xf32>
    %c58 = arith.constant 58 : index
    %319 = memref.load %arg1[%c58] : memref<80xf32, #tpu.memory_space<smem>>
    %320 = vector.broadcast %319 : f32 to vector<6x256xf32>
    %321 = arith.mulf %0, %320 : vector<6x256xf32>
    %322 = arith.addf %318, %321 : vector<6x256xf32>
    %c59 = arith.constant 59 : index
    %323 = memref.load %arg1[%c59] : memref<80xf32, #tpu.memory_space<smem>>
    %324 = vector.broadcast %323 : f32 to vector<6x256xf32>
    %325 = arith.mulf %36, %324 : vector<6x256xf32>
    %326 = arith.addf %322, %325 : vector<6x256xf32>
    %c60 = arith.constant 60 : index
    %327 = memref.load %arg1[%c60] : memref<80xf32, #tpu.memory_space<smem>>
    %328 = vector.broadcast %327 : f32 to vector<6x256xf32>
    %329 = arith.mulf %44, %328 : vector<6x256xf32>
    %330 = arith.addf %326, %329 : vector<6x256xf32>
    %c61 = arith.constant 61 : index
    %331 = memref.load %arg1[%c61] : memref<80xf32, #tpu.memory_space<smem>>
    %332 = vector.broadcast %331 : f32 to vector<6x256xf32>
    %333 = arith.mulf %49, %332 : vector<6x256xf32>
    %334 = arith.addf %330, %333 : vector<6x256xf32>
    %c62 = arith.constant 62 : index
    %335 = memref.load %arg1[%c62] : memref<80xf32, #tpu.memory_space<smem>>
    %336 = vector.broadcast %335 : f32 to vector<6x256xf32>
    %337 = arith.mulf %57, %336 : vector<6x256xf32>
    %338 = arith.addf %334, %337 : vector<6x256xf32>
    %c78 = arith.constant 78 : index
    %339 = memref.load %arg1[%c78] : memref<80xf32, #tpu.memory_space<smem>>
    %340 = vector.broadcast %339 : f32 to vector<6x256xf32>
    %341 = arith.addf %338, %340 : vector<6x256xf32>
    %cst_34 = arith.constant 0.000000e+00 : f32
    %342 = vector.broadcast %cst_34 : f32 to vector<6x256xf32>
    %343 = arith.maximumf %341, %342 : vector<6x256xf32>
    %c0_35 = arith.constant 0 : index
    %c1536 = arith.constant 1536 : index
    %344 = vector.load %arg6[%c0_35, %c1536] : memref<6x2048xf32, #tpu.memory_space<vmem>>, vector<6x256xf32>
    tpu.vector_store %arg6[%c0_35, %c1536], %343 {strides = array<i32>} : memref<6x2048xf32, #tpu.memory_space<vmem>>, vector<6x256xf32>,
    %c63 = arith.constant 63 : index
    %345 = memref.load %arg1[%c63] : memref<80xf32, #tpu.memory_space<smem>>
    %346 = vector.broadcast %345 : f32 to vector<6x256xf32>
    %347 = arith.mulf %13, %346 : vector<6x256xf32>
    %c64 = arith.constant 64 : index
    %348 = memref.load %arg1[%c64] : memref<80xf32, #tpu.memory_space<smem>>
    %349 = vector.broadcast %348 : f32 to vector<6x256xf32>
    %350 = arith.mulf %18, %349 : vector<6x256xf32>
    %351 = arith.addf %347, %350 : vector<6x256xf32>
    %c65 = arith.constant 65 : index
    %352 = memref.load %arg1[%c65] : memref<80xf32, #tpu.memory_space<smem>>
    %353 = vector.broadcast %352 : f32 to vector<6x256xf32>
    %354 = arith.mulf %26, %353 : vector<6x256xf32>
    %355 = arith.addf %351, %354 : vector<6x256xf32>
    %c66 = arith.constant 66 : index
    %356 = memref.load %arg1[%c66] : memref<80xf32, #tpu.memory_space<smem>>
    %357 = vector.broadcast %356 : f32 to vector<6x256xf32>
    %358 = arith.mulf %31, %357 : vector<6x256xf32>
    %359 = arith.addf %355, %358 : vector<6x256xf32>
    %c67 = arith.constant 67 : index
    %360 = memref.load %arg1[%c67] : memref<80xf32, #tpu.memory_space<smem>>
    %361 = vector.broadcast %360 : f32 to vector<6x256xf32>
    %362 = arith.mulf %0, %361 : vector<6x256xf32>
    %363 = arith.addf %359, %362 : vector<6x256xf32>
    %c68 = arith.constant 68 : index
    %364 = memref.load %arg1[%c68] : memref<80xf32, #tpu.memory_space<smem>>
    %365 = vector.broadcast %364 : f32 to vector<6x256xf32>
    %366 = arith.mulf %36, %365 : vector<6x256xf32>
    %367 = arith.addf %363, %366 : vector<6x256xf32>
    %c69 = arith.constant 69 : index
    %368 = memref.load %arg1[%c69] : memref<80xf32, #tpu.memory_space<smem>>
    %369 = vector.broadcast %368 : f32 to vector<6x256xf32>
    %370 = arith.mulf %44, %369 : vector<6x256xf32>
    %371 = arith.addf %367, %370 : vector<6x256xf32>
    %c70 = arith.constant 70 : index
    %372 = memref.load %arg1[%c70] : memref<80xf32, #tpu.memory_space<smem>>
    %373 = vector.broadcast %372 : f32 to vector<6x256xf32>
    %374 = arith.mulf %49, %373 : vector<6x256xf32>
    %375 = arith.addf %371, %374 : vector<6x256xf32>
    %c71 = arith.constant 71 : index
    %376 = memref.load %arg1[%c71] : memref<80xf32, #tpu.memory_space<smem>>
    %377 = vector.broadcast %376 : f32 to vector<6x256xf32>
    %378 = arith.mulf %57, %377 : vector<6x256xf32>
    %379 = arith.addf %375, %378 : vector<6x256xf32>
    %c79 = arith.constant 79 : index
    %380 = memref.load %arg1[%c79] : memref<80xf32, #tpu.memory_space<smem>>
    %381 = vector.broadcast %380 : f32 to vector<6x256xf32>
    %382 = arith.addf %379, %381 : vector<6x256xf32>
    %cst_36 = arith.constant 0.000000e+00 : f32
    %383 = vector.broadcast %cst_36 : f32 to vector<6x256xf32>
    %384 = arith.maximumf %382, %383 : vector<6x256xf32>
    %c0_37 = arith.constant 0 : index
    %c1792 = arith.constant 1792 : index
    %385 = vector.load %arg6[%c0_37, %c1792] : memref<6x2048xf32, #tpu.memory_space<vmem>>, vector<6x256xf32>
    tpu.vector_store %arg6[%c0_37, %c1792], %384 {strides = array<i32>} : memref<6x2048xf32, #tpu.memory_space<vmem>>, vector<6x256xf32>,
    %c192 = arith.constant 192 : index
    %c0_38 = arith.constant 0 : index
    %386 = vector.load %arg4[%c192, %c0_38] : memref<200x64xf32, #tpu.memory_space<vmem>>, vector<1x32xf32>
    %c0_39 = arith.constant 0 : index
    %c0_40 = arith.constant 0 : index
    %387 = vector.load %arg6[%c0_39, %c0_40] : memref<6x2048xf32, #tpu.memory_space<vmem>>, vector<6x2048xf32>
    %c0_41 = arith.constant 0 : index
    %c0_42 = arith.constant 0 : index
    %388 = vector.load %arg3[%c0_41, %c0_42] : memref<2048x32xf32, #tpu.memory_space<vmem>>, vector<2048x32xf32>
    %cst_43 = arith.constant dense<0.000000e+00> : vector<6x32xf32>
    %389 = tpu.matmul %387, %388, %cst_43 {dimension_numbers = #tpu.dot_dimension_numbers<[1], [0], [0], [1], [0, 0, 1, 1], [], []>} : vector<6x2048xf32>, vector<2048x32xf32>, vector<6x32xf32> -> vector<6x32xf32>
    %390 = vector.broadcast %386 : vector<1x32xf32> to vector<6x32xf32>
    %391 = arith.addf %389, %390 : vector<6x32xf32>
    %cst_44 = arith.constant 0.000000e+00 : f32
    %392 = vector.broadcast %cst_44 : f32 to vector<6x32xf32>
    %393 = arith.maximumf %391, %392 : vector<6x32xf32>
    %c0_45 = arith.constant 0 : index
    %c0_46 = arith.constant 0 : index
    %394 = vector.load %arg4[%c0_45, %c0_46] : memref<200x64xf32, #tpu.memory_space<vmem>>, vector<32x32xf32>
    %c193 = arith.constant 193 : index
    %c0_47 = arith.constant 0 : index
    %395 = vector.load %arg4[%c193, %c0_47] : memref<200x64xf32, #tpu.memory_space<vmem>>, vector<1x32xf32>
    %c32_48 = arith.constant 32 : index
    %c0_49 = arith.constant 0 : index
    %396 = vector.load %arg4[%c32_48, %c0_49] : memref<200x64xf32, #tpu.memory_space<vmem>>, vector<32x32xf32>
    %c194 = arith.constant 194 : index
    %c0_50 = arith.constant 0 : index
    %397 = vector.load %arg4[%c194, %c0_50] : memref<200x64xf32, #tpu.memory_space<vmem>>, vector<1x32xf32>
    %cst_51 = arith.constant dense<0.000000e+00> : vector<6x32xf32>
    %398 = tpu.matmul %393, %394, %cst_51 {dimension_numbers = #tpu.dot_dimension_numbers<[1], [0], [0], [1], [0, 0, 1, 1], [], []>} : vector<6x32xf32>, vector<32x32xf32>, vector<6x32xf32> -> vector<6x32xf32>
    %399 = vector.broadcast %395 : vector<1x32xf32> to vector<6x32xf32>
    %400 = arith.addf %398, %399 : vector<6x32xf32>
    %cst_52 = arith.constant 0.000000e+00 : f32
    %401 = vector.broadcast %cst_52 : f32 to vector<6x32xf32>
    %402 = arith.maximumf %400, %401 : vector<6x32xf32>
    %cst_53 = arith.constant dense<0.000000e+00> : vector<6x32xf32>
    %403 = tpu.matmul %402, %396, %cst_53 {dimension_numbers = #tpu.dot_dimension_numbers<[1], [0], [0], [1], [0, 0, 1, 1], [], []>} : vector<6x32xf32>, vector<32x32xf32>, vector<6x32xf32> -> vector<6x32xf32>
    %404 = vector.broadcast %397 : vector<1x32xf32> to vector<6x32xf32>
    %405 = arith.addf %403, %404 : vector<6x32xf32>
    %c64_54 = arith.constant 64 : index
    %c0_55 = arith.constant 0 : index
    %406 = vector.load %arg4[%c64_54, %c0_55] : memref<200x64xf32, #tpu.memory_space<vmem>>, vector<64x64xf32>
    %c195 = arith.constant 195 : index
    %c0_56 = arith.constant 0 : index
    %407 = vector.load %arg4[%c195, %c0_56] : memref<200x64xf32, #tpu.memory_space<vmem>>, vector<1x64xf32>
    %c128 = arith.constant 128 : index
    %c0_57 = arith.constant 0 : index
    %408 = vector.load %arg4[%c128, %c0_57] : memref<200x64xf32, #tpu.memory_space<vmem>>, vector<64x4xf32>
    %c196 = arith.constant 196 : index
    %c0_58 = arith.constant 0 : index
    %409 = vector.load %arg4[%c196, %c0_58] : memref<200x64xf32, #tpu.memory_space<vmem>>, vector<1x4xf32>
    %410 = tpu.concatenate %393, %405 in 1 : vector<6x32xf32>, vector<6x32xf32> -> vector<6x64xf32>
    %cst_59 = arith.constant dense<0.000000e+00> : vector<6x64xf32>
    %411 = tpu.matmul %410, %406, %cst_59 {dimension_numbers = #tpu.dot_dimension_numbers<[1], [0], [0], [1], [0, 0, 1, 1], [], []>} : vector<6x64xf32>, vector<64x64xf32>, vector<6x64xf32> -> vector<6x64xf32>
    %412 = vector.broadcast %407 : vector<1x64xf32> to vector<6x64xf32>
    %413 = arith.addf %411, %412 : vector<6x64xf32>
    %cst_60 = arith.constant 0.000000e+00 : f32
    %414 = vector.broadcast %cst_60 : f32 to vector<6x64xf32>
    %415 = arith.maximumf %413, %414 : vector<6x64xf32>
    %cst_61 = arith.constant dense<0.000000e+00> : vector<6x4xf32>
    %416 = tpu.matmul %415, %408, %cst_61 {dimension_numbers = #tpu.dot_dimension_numbers<[1], [0], [0], [1], [0, 0, 1, 1], [], []>} : vector<6x64xf32>, vector<64x4xf32>, vector<6x4xf32> -> vector<6x4xf32>
    %417 = vector.broadcast %409 : vector<1x4xf32> to vector<6x4xf32>
    %418 = arith.addf %416, %417 : vector<6x4xf32>
    %cst_62 = arith.constant 0.000000e+00 : f32
    %419 = vector.broadcast %cst_62 : f32 to vector<6x4xf32>
    %420 = arith.subf %419, %418 : vector<6x4xf32>
    %421 = math.exp %420 : vector<6x4xf32>
    %cst_63 = arith.constant 1.000000e+00 : f32
    %422 = vector.broadcast %cst_63 : f32 to vector<6x4xf32>
    %423 = arith.addf %422, %421 : vector<6x4xf32>
    %cst_64 = arith.constant 1.000000e+00 : f32
    %424 = vector.broadcast %cst_64 : f32 to vector<6x4xf32>
    %425 = arith.divf %424, %423 : vector<6x4xf32>
    %cst_65 = arith.constant 0.000000e+00 : f32
    %426 = vector.broadcast %cst_65 : f32 to vector<6x128xf32>
    %c0_66 = arith.constant 0 : index
    %c0_67 = arith.constant 0 : index
    %427 = vector.load %arg5[%c0_66, %c0_67] : memref<6x128xf32, #tpu.memory_space<vmem>>, vector<6x128xf32>
    tpu.vector_store %arg5[%c0_66, %c0_67], %426 {strides = array<i32>} : memref<6x128xf32, #tpu.memory_space<vmem>>, vector<6x128xf32>,
    %c0_68 = arith.constant 0 : index
    %c0_69 = arith.constant 0 : index
    %428 = vector.load %arg5[%c0_68, %c0_69] : memref<6x128xf32, #tpu.memory_space<vmem>>, vector<6x32xf32>
    tpu.vector_store %arg5[%c0_68, %c0_69], %393 {strides = array<i32>} : memref<6x128xf32, #tpu.memory_space<vmem>>, vector<6x32xf32>,
    %c0_70 = arith.constant 0 : index
    %c32_71 = arith.constant 32 : index
    %429 = vector.load %arg5[%c0_70, %c32_71] : memref<6x128xf32, #tpu.memory_space<vmem>>, vector<6x32xf32>
    tpu.vector_store %arg5[%c0_70, %c32_71], %405 {strides = array<i32>} : memref<6x128xf32, #tpu.memory_space<vmem>>, vector<6x32xf32>,
    %c0_72 = arith.constant 0 : index
    %c64_73 = arith.constant 64 : index
    %430 = vector.load %arg5[%c0_72, %c64_73] : memref<6x128xf32, #tpu.memory_space<vmem>>, vector<6x4xf32>
    tpu.vector_store %arg5[%c0_72, %c64_73], %425 {strides = array<i32>} : memref<6x128xf32, #tpu.memory_space<vmem>>, vector<6x4xf32>,
    return
  }
  func.func @transform_0(%arg0: i32) -> i32 {
    %c0_i32 = arith.constant 0 : i32
    %c0_i32_0 = arith.constant 0 : i32
    return %c0_i32 : i32
  }
  func.func @transform_1(%arg0: i32) -> (i32, i32) {
    %c0_i32 = arith.constant 0 : i32
    %c0_i32_0 = arith.constant 0 : i32
    %c0_i32_1 = arith.constant 0 : i32
    return %c0_i32, %c0_i32_0 : i32, i32
  }
  func.func @transform_2(%arg0: i32) -> (i32, i32) {
    %c0_i32 = arith.constant 0 : i32
    %c0_i32_0 = arith.constant 0 : i32
    %c0_i32_1 = arith.constant 0 : i32
    return %c0_i32, %c0_i32_0 : i32, i32
  }
  func.func @transform_3(%arg0: i32) -> (i32, i32) {
    %c0_i32 = arith.constant 0 : i32
    %c0_i32_0 = arith.constant 0 : i32
    %c0_i32_1 = arith.constant 0 : i32
    return %c0_i32, %c0_i32_0 : i32, i32
  }
  func.func @transform_4(%arg0: i32) -> (i32, i32) {
    %c0_i32 = arith.constant 0 : i32
    %c0_i32_0 = arith.constant 0 : i32
    %c0_i32_1 = arith.constant 0 : i32
    return %c0_i32, %c0_i32_0 : i32, i32
  }
}

</mosaic_0001>

<bundles_post_ra>
// kernel: model_forward.1
= control target key start
LH: loop header
LB: loop body
LE: loop exit
PB: predicated region body
PF: predicated region fallthrough
CT: control target
= control target key end

     0   :  { %s4005_s0 = inlined_call_operand.vmem [shape: f32[80], index: 0, kind: input, shape index: {}]   ;;  %s4006_s1 = inlined_call_operand.vmem [shape: f32[6,256], index: 1, kind: input, shape index: {}]   ;;  %s4007_s2 = inlined_call_operand.vmem [shape: f32[2048,32], index: 2, kind: input, shape index: {}]   ;;  %s4008_s3 = inlined_call_operand.vmem [shape: f32[200,64], index: 3, kind: input, shape index: {}]   ;;  %s4009_s4 = inlined_call_operand.vmem [shape: f32[6,128], index: 4, kind: output, shape index: {}]  }
   0x1   :  { %4103 = sst [smem:[#allocation74_spill]] %s4007_s2 }
   0x2   :  { %4104 = sst [smem:[#allocation75_spill]] %s4008_s3 }
   0x3   :  { %4105 = sst [smem:[#allocation76_spill]] %s4009_s4 }
   0x4   :  { %9 = vsyncpa [#allocation4], 0  ;;  %s16_s17 = sshll.u32 %s4005_s0, 4  ;;  %s17_s17 = int_to_ptr.vmem [resolvable:$true] %s16_s17 }
   0x5   :  { %s2285_s18 = scalar_lea.vmem %s17_s17, 16  ;;  %p2290_p1 = scmp.lt.s32.totalorder %s17_s17, %s17_s17 }
   0x6   :  { %p2286_p0 = scmp.ne.s32.totalorder %s17_s17, %s2285_s18  ;;  %p2291_p2 = scmp.lt.s32.totalorder %s2285_s18, %s2285_s18 }
   0x8   :  { %p2292_p3 = por %p2291_p2, %p2290_p1 }
   0xa   :  { %p2293_p4 = pnand %p2292_p3, %p2286_p0 }
   0xc   :  { %2296 = shalt.err (!%p2293_p4)
}
   0xd   :  { %s2299_s19 = smov [#allocation3]  }
   0xe   :  { %19 = dma.vmem_to_smem %s17_s17, 16, %s2299_s19, [#allocation4]  }
   0xf   :  { %2297 = dma.done.wait [#allocation4], 16  }
  0x10   :  { %2298 = vsyncadd [#allocation4], 4294967280 }
  0x11   :  { %29 = sfence }
  0x12   :  { %v2343_v0 = vld [vmem:[%s4006_s1] sm:$0x3f]  ;;  %s2300_s22 = smov 16   ;;  %s2301_s0 = smov 17   ;;  %v2350_v1 = vld [vmem:[%s4006_s1 + $0x8] sm:$0x3f] }
  0x13   :  { %54 = vrot.lane.b32.xlu1 %v2343_v0, %s2300_s22  ;;  %39 = vrot.lane.b32.xlu0 %v2343_v0, %s2301_s0  ;;  %s2302_s25 = smov 15   ;;  %s2303_s26 = smov 1   ;;  %v655_v2 = vld [vmem:[%s4007_s2 + $0xf8] sm:$0xff]  ;;  %v654_v6 = vld [vmem:[%s4007_s2 + $0xf0] sm:$0xff] }
  0x14   :  { %s2304_s27 = smov 127   ;;  %v687_v3 = vld [vmem:[%s4007_s2 + $0x1f8] sm:$0xff]  ;;  %s2305_s5 = smov 113   ;;  %1900 = vmatprep.subr.mxu0 %v655_v2  ;;  %v686_v7 = vld [vmem:[%s4007_s2 + $0x1f0] sm:$0xff]  ;;  %v653_v10 = vld [vmem:[%s4007_s2 + $0xe8] sm:$0xff] }
  0x15   :  { %v639_v4 = vld [vmem:[%s4007_s2 + $0x78] sm:$0xff]  ;;  %1935 = vmatprep.subr.mxu1 %v687_v3  ;;  %s2306_s10 = smov 112   ;;  %s2307_s11 = smov 111   ;;  %v638_v8 = vld [vmem:[%s4007_s2 + $0x70] sm:$0xff]  ;;  %v685_v11 = vld [vmem:[%s4007_s2 + $0x1e8] sm:$0xff] }
  0x16   :  { %v671_v5 = vld [vmem:[%s4007_s2 + $0x178] sm:$0xff]  ;;  %1901 = vmatpush3.msra.mxu0 %v639_v4  ;;  %s2378_s12 = sld [smem:[#allocation3 + $0x1]]  ;;  %v670_v9 = vld [vmem:[%s4007_s2 + $0x170] sm:$0xff]  ;;  %v637_v12 = vld [vmem:[%s4007_s2 + $0x68] sm:$0xff] }
  0x17   :  { %56 = vrot.lane.b32.xlu1 %v2350_v1, %s2300_s22  ;;  %41 = vrot.lane.b32.xlu0 %v2350_v1, %s2301_s0  ;;  %s2386_s17 = sld [smem:[#allocation3 + $0xa]]  ;;  %v669_v13 = vld [vmem:[%s4007_s2 + $0x168] sm:$0xff]  ;;  %v652_v14 = vld [vmem:[%s4007_s2 + $0xe0] sm:$0xff] }
  0x18   :  { %1936 = vmatpush3.msra.mxu1 %v671_v5  ;;  %1902 = vmatprep.subr.mxu0 %v654_v6  ;;  %s2394_s22 = sld [smem:[#allocation3 + $0x13]]  ;;  %v684_v15 = vld [vmem:[%s4007_s2 + $0x1e0] sm:$0xff]  ;;  %v651_v18 = vld [vmem:[%s4007_s2 + $0xd8] sm:$0xff]  ;;  %v650_v22 = vld [vmem:[%s4007_s2 + $0xd0] sm:$0xff]  ;;  %v32_v6 = vlaneseq }
  0x19   :  { %1937 = vmatprep.subr.mxu1 %v686_v7  ;;  %1903 = vmatpush3.msra.mxu0 %v638_v8  ;;  %s2410_s30 = sld [smem:[#allocation3 + $0x25]]  ;;  %v636_v16 = vld [vmem:[%s4007_s2 + $0x60] sm:$0xff]  ;;  %v683_v19 = vld [vmem:[%s4007_s2 + $0x1d8] sm:$0xff]  ;;  %v682_v23 = vld [vmem:[%s4007_s2 + $0x1d0] sm:$0xff] }
  0x1a   :  { %1938 = vmatpush3.msra.mxu1 %v670_v9  ;;  %1904 = vmatprep.subr.mxu0 %v653_v10  ;;  %s2414_s6 = sld [smem:[#allocation3 + $0x37]]  ;;  %v668_v17 = vld [vmem:[%s4007_s2 + $0x160] sm:$0xff]  ;;  %v635_v20 = vld [vmem:[%s4007_s2 + $0x58] sm:$0xff]  ;;  %v634_v24 = vld [vmem:[%s4007_s2 + $0x50] sm:$0xff]  ;;  %v2674_v7 = vand.u32 127, %v32_v6 }
  0x1b   :  { %65 = vrot.lane.b32.xlu1 %v2350_v1, %s2302_s25  ;;  %63 = vrot.lane.b32.xlu0 %v2343_v0, %s2302_s25  ;;  %s2416_s7 = sld [smem:[#allocation3 + $0x40]]  ;;  %v667_v21 = vld [vmem:[%s4007_s2 + $0x158] sm:$0xff]  ;;  %v666_v25 = vld [vmem:[%s4007_s2 + $0x150] sm:$0xff] }
  0x1c   :  { %4106 = sst [smem:[#allocation6_spill]] %s2378_s12  ;;  %1939 = vmatprep.subr.mxu1 %v685_v11  ;;  %1905 = vmatpush3.msra.mxu0 %v637_v12  ;;  %v649_v26 = vld [vmem:[%s4007_s2 + $0xc8] sm:$0xff]  ;;  %v648_v30 = vld [vmem:[%s4007_s2 + $0xc0] sm:$0xff]  ;;  %v647_v34 = vld [vmem:[%s4007_s2 + $0xb8] sm:$0xff]  ;;  %v2685_v8 = vadd.s32 128, %v2674_v7  ;;  %v37_v9 = vshrl.u32 %v2674_v7, 4  ;;  %v132_v10 = vstv %s2378_s12 }
  0x1d   :  { %4107 = sst [smem:[#allocation7_spill]] %s2386_s17  ;;  %1940 = vmatpush3.msra.mxu1 %v669_v13  ;;  %1906 = vmatprep.subr.mxu0 %v652_v14  ;;  %v681_v27 = vld [vmem:[%s4007_s2 + $0x1c8] sm:$0xff]  ;;  %v680_v31 = vld [vmem:[%s4007_s2 + $0x1c0] sm:$0xff]  ;;  %v679_v35 = vld [vmem:[%s4007_s2 + $0x1b8] sm:$0xff]  ;;  %v35_v11 = vand.u32 15, %v2674_v7  ;;  %v192_v13 = vstv %s2386_s17  ;;  %vm58_vm0 = vcmp.lt.s32.totalorder %v2674_v7, 16 }
  0x1e   :  { %4108 = sst [smem:[#allocation8_spill]] %s2394_s22  ;;  %1941 = vmatprep.subr.mxu1 %v684_v15  ;;  %1907 = vmatpush3.msra.mxu0 %v636_v16  ;;  %v633_v28 = vld [vmem:[%s4007_s2 + $0x48] sm:$0xff]  ;;  %v632_v32 = vld [vmem:[%s4007_s2 + $0x40] sm:$0xff]  ;;  %v631_v36 = vld [vmem:[%s4007_s2 + $0x38] sm:$0xff]  ;;  %v36_v12 = vand.u32 15, %v2685_v8  ;;  %v252_v14 = vstv %s2394_s22  ;;  %vm43_vm1 = vcmp.lt.s32.totalorder %v2674_v7, 17 }
  0x1f   :  { %78 = vrot.lane.b32.xlu1 %v2350_v1, %s2303_s26  ;;  %76 = vrot.lane.b32.xlu0 %v2343_v0, %s2303_s26  ;;  %s2402_s26 = sld [smem:[#allocation3 + $0x1c]]  ;;  %v665_v29 = vld [vmem:[%s4007_s2 + $0x148] sm:$0xff]  ;;  %v664_v33 = vld [vmem:[%s4007_s2 + $0x140] sm:$0xff]  ;;  %vm2811_vm2 = vcmp.ge.s32.totalorder %v37_v9, 1  ;;  %vm2827_vm3 = vcmp.ge.s32.totalorder %v35_v11, 1  ;;  %vm67_vm5 = vcmp.lt.s32.totalorder %v2674_v7, 15 }
  0x20   :  { %4110 = sst [smem:[#allocation10_spill]] %s2410_s30  ;;  %1942 = vmatpush3.msra.mxu1 %v668_v17  ;;  %1908 = vmatprep.subr.mxu0 %v651_v18  ;;  %v663_v37 = vld [vmem:[%s4007_s2 + $0x138] sm:$0xff]  ;;  %v646_v38 = vld [vmem:[%s4007_s2 + $0xb0] sm:$0xff]  ;;  %v645_v42 = vld [vmem:[%s4007_s2 + $0xa8] sm:$0xff]  ;;  %v372_v16 = vstv %s2410_s30  ;;  %vm2853_vm4 = vcmp.ge.s32.totalorder %v36_v12, 1  ;;  %vm2900_vm6 = vcmp.le.s32.totalorder %v35_v11, 14 }
  0x21   :  { %4112 = sst [smem:[#allocation12_spill]] %s2414_s6  ;;  %1943 = vmatprep.subr.mxu1 %v683_v19  ;;  %1909 = vmatpush3.msra.mxu0 %v635_v20  ;;  %v678_v39 = vld [vmem:[%s4007_s2 + $0x1b0] sm:$0xff]  ;;  %v677_v43 = vld [vmem:[%s4007_s2 + $0x1a8] sm:$0xff]  ;;  %v644_v46 = vld [vmem:[%s4007_s2 + $0xa0] sm:$0xff]  ;;  %v492_v18 = vstv %s2414_s6  ;;  %vm2926_vm8 = vcmp.le.s32.totalorder %v36_v12, 14  ;;  %vm80_vm9 = vcmp.lt.s32.totalorder %v2674_v7, 1 }
  0x22   :  { %4113 = sst [smem:[#allocation13_spill]] %s2416_s7  ;;  %1944 = vmatpush3.msra.mxu1 %v667_v21  ;;  %1910 = vmatprep.subr.mxu0 %v650_v22  ;;  %v630_v40 = vld [vmem:[%s4007_s2 + $0x30] sm:$0xff]  ;;  %v629_v44 = vld [vmem:[%s4007_s2 + $0x28] sm:$0xff]  ;;  %v676_v47 = vld [vmem:[%s4007_s2 + $0x1a0] sm:$0xff]  ;;  %v552_v19 = vstv %s2416_s7  ;;  %vm89_vm11 = vcmp.lt.s32.totalorder %v2674_v7, 127  ;;  %vm98_vm13 = vcmp.lt.s32.totalorder %v2674_v7, 113 }
  0x23   :  { %87 = vrot.lane.b32.xlu1 %v2350_v1, %s2304_s27  ;;  %85 = vrot.lane.b32.xlu0 %v2343_v0, %s2304_s27  ;;  %s2418_s8 = sld [smem:[#allocation3]]  ;;  %v662_v41 = vld [vmem:[%s4007_s2 + $0x130] sm:$0xff]  ;;  %v661_v45 = vld [vmem:[%s4007_s2 + $0x128] sm:$0xff]  ;;  %vm50_vm7 = vmand %vm2811_vm2, %vm2827_vm3  ;;  %vm111_vm14 = vcmp.lt.s32.totalorder %v2674_v7, 112 }
  0x24   :  { %s2426_s14 = sld [smem:[#allocation3 + $0x9]]  ;;  %1945 = vmatprep.subr.mxu1 %v682_v23  ;;  %1911 = vmatpush3.msra.mxu0 %v634_v24  ;;  %v628_v48 = vld [vmem:[%s4007_s2 + $0x20] sm:$0xff]  ;;  %v643_v50 = vld [vmem:[%s4007_s2 + $0x98] sm:$0xff]  ;;  %v642_v54 = vld [vmem:[%s4007_s2 + $0x90] sm:$0xff] }
  0x25   :  { %4109 = sst [smem:[#allocation9_spill]] %s2402_s26  ;;  %1946 = vmatpush3.msra.mxu1 %v666_v25  ;;  %1912 = vmatprep.subr.mxu0 %v649_v26  ;;  %v660_v49 = vld [vmem:[%s4007_s2 + $0x120] sm:$0xff]  ;;  %v675_v51 = vld [vmem:[%s4007_s2 + $0x198] sm:$0xff]  ;;  %v674_v55 = vld [vmem:[%s4007_s2 + $0x190] sm:$0xff]  ;;  %v312_v15 = vstv %s2402_s26 }
  0x26   :  { %s2434_s20 = sld [smem:[#allocation3 + $0x12]]  ;;  %1947 = vmatprep.subr.mxu1 %v681_v27  ;;  %1913 = vmatpush3.msra.mxu0 %v633_v28  ;;  %v627_v52 = vld [vmem:[%s4007_s2 + $0x18] sm:$0xff]  ;;  %v626_v56 = vld [vmem:[%s4007_s2 + $0x10] sm:$0xff]  ;;  %v641_v58 = vld [vmem:[%s4007_s2 + $0x88] sm:$0xff] }
  0x27   :  { %96 = vrot.lane.b32.xlu1 %v2350_v1, %s2305_s5  ;;  %94 = vrot.lane.b32.xlu0 %v2343_v0, %s2305_s5  ;;  %s2412_s5 = sld [smem:[#allocation3 + $0x2e]]  ;;  %v659_v53 = vld [vmem:[%s4007_s2 + $0x118] sm:$0xff]  ;;  %v658_v57 = vld [vmem:[%s4007_s2 + $0x110] sm:$0xff]  ;;  %vm72_vm10 = vmand %vm2811_vm2, %vm2900_vm6 }
  0x28   :  { %s2442_s25 = sld [smem:[#allocation3 + $0x1b]]  ;;  %1948 = vmatpush3.msra.mxu1 %v665_v29  ;;  %1914 = vmatprep.subr.mxu0 %v648_v30  ;;  %v673_v59 = vld [vmem:[%s4007_s2 + $0x188] sm:$0xff]  ;;  %v640_v62 = vld [vmem:[%s4007_s2 + $0x80] sm:$0xff]  ;;  %v719_v4 = vld [vmem:[%s4007_s2 + $0x2f8] sm:$0xff] }
  0x29   :  { %4114 = sst [smem:[#allocation14_spill]] %s2418_s8  ;;  %1949 = vmatprep.subr.mxu1 %v680_v31  ;;  %1915 = vmatpush3.msra.mxu0 %v632_v32  ;;  %v625_v60 = vld [vmem:[%s4007_s2 + $0x8] sm:$0xff]  ;;  %v672_v63 = vld [vmem:[%s4007_s2 + $0x180] sm:$0xff]  ;;  %v751_v5 = vld [vmem:[%s4007_s2 + $0x3f8] sm:$0xff]  ;;  %v128_v20 = vstv %s2418_s8 }
  0x2a   :  { %4115 = sst [smem:[#allocation15_spill]] %s2426_s14  ;;  %1950 = vmatpush3.msra.mxu1 %v664_v33  ;;  %1916 = vmatprep.subr.mxu0 %v647_v34  ;;  %v657_v61 = vld [vmem:[%s4007_s2 + $0x108] sm:$0xff]  ;;  %v624_v2 = vld [vmem:[%s4007_s2] sm:$0xff]  ;;  %v188_v21 = vstv %s2426_s14 }
  0x2b   :  { %109 = vrot.lane.b32.xlu1 %v2350_v1, %s2306_s10  ;;  %107 = vrot.lane.b32.xlu0 %v2343_v0, %s2306_s10  ;;  %s2450_s9 = sld [smem:[#allocation3 + $0x24]]  ;;  %v656_v3 = vld [vmem:[%s4007_s2 + $0x100] sm:$0xff] }
  0x2c   :  { %4116 = sst [smem:[#allocation16_spill]] %s2434_s20  ;;  %1951 = vmatprep.subr.mxu1 %v679_v35  ;;  %1917 = vmatpush3.msra.mxu0 %v631_v36  ;;  %v248_v22 = vstv %s2434_s20 }
  0x2d   :  { %4111 = sst [smem:[#allocation11_spill]] %s2412_s5  ;;  %1952 = vmatpush3.msra.mxu1 %v663_v37  ;;  %1918 = vmatprep.subr.mxu0 %v646_v38  ;;  %v432_v17 = vstv %s2412_s5 }
  0x2e   :  { %4117 = sst [smem:[#allocation17_spill]] %s2442_s25  ;;  %1953 = vmatprep.subr.mxu1 %v678_v39  ;;  %1919 = vmatpush3.msra.mxu0 %v630_v40  ;;  %v308_v23 = vstv %s2442_s25 }
  0x2f   :  { %118 = vrot.lane.b32.xlu1 %v2350_v1, %s2307_s11  ;;  %116 = vrot.lane.b32.xlu0 %v2343_v0, %s2307_s11  ;;  %s2452_s10 = sld [smem:[#allocation3 + $0x2d]] }
  0x30   :  { %s2454_s11 = sld [smem:[#allocation3 + $0x36]]  ;;  %1954 = vmatpush3.msra.mxu1 %v662_v41  ;;  %1920 = vmatprep.subr.mxu0 %v645_v42 }
  0x31   :  { %4118 = sst [smem:[#allocation18_spill]] %s2450_s9  ;;  %1955 = vmatprep.subr.mxu1 %v677_v43  ;;  %1921 = vmatpush3.msra.mxu0 %v629_v44  ;;  %v368_v24 = vstv %s2450_s9 }
  0x32   :  { %s2456_s13 = sld [smem:[#allocation3 + $0x3f]]  ;;  %1956 = vmatpush3.msra.mxu1 %v661_v45  ;;  %1922 = vmatprep.subr.mxu0 %v644_v46 }
  0x33   :  { %s2458_s15 = sld [smem:[#allocation3 + $0x2]]  ;;  %1957 = vmatprep.subr.mxu1 %v676_v47  ;;  %1923 = vmatpush3.msra.mxu0 %v628_v48 }
  0x34   :  { %s2460_s16 = sld [smem:[#allocation3 + $0xb]]  ;;  %1958 = vmatpush3.msra.mxu1 %v660_v49  ;;  %1924 = vmatprep.subr.mxu0 %v643_v50 }
  0x35   :  { %4119 = sst [smem:[#allocation19_spill]] %s2452_s10  ;;  %1959 = vmatprep.subr.mxu1 %v675_v51  ;;  %1925 = vmatpush3.msra.mxu0 %v627_v52 }
  0x36   :  { %4120 = sst [smem:[#allocation20_spill]] %s2454_s11  ;;  %1960 = vmatpush3.msra.mxu1 %v659_v53  ;;  %1926 = vmatprep.subr.mxu0 %v642_v54 }
  0x37   :  { %s2462_s18 = sld [smem:[#allocation3 + $0x14]]  ;;  %1961 = vmatprep.subr.mxu1 %v674_v55  ;;  %1927 = vmatpush3.msra.mxu0 %v626_v56 }
  0x38   :  { %4121 = sst [smem:[#allocation21_spill]] %s2456_s13  ;;  %1962 = vmatpush3.msra.mxu1 %v658_v57  ;;  %1928 = vmatprep.subr.mxu0 %v641_v58 }
  0x39   :  { %4122 = sst [smem:[#allocation22_spill]] %s2458_s15  ;;  %1963 = vmatprep.subr.mxu1 %v673_v59  ;;  %1929 = vmatpush3.msra.mxu0 %v625_v60 }
  0x3a   :  { %4123 = sst [smem:[#allocation23_spill]] %s2460_s16  ;;  %1964 = vmatpush3.msra.mxu1 %v657_v61  ;;  %1930 = vmatprep.subr.mxu0 %v640_v62 }
  0x3b   :  { %s2470_s24 = sld [smem:[#allocation3 + $0x1d]]  ;;  %1965 = vmatprep.subr.mxu1 %v672_v63  ;;  %1931 = vmatpush3.msra.mxu0 %v624_v2 }
  0x3c   :  { %s2478_s3 = sld [smem:[#allocation3 + $0x26]]  ;;  %1966 = vmatpush3.msra.mxu1 %v656_v3  ;;  %1970 = vmatprep.subr.mxu0 %v719_v4 }
  0x3d   :  { %4124 = sst [smem:[#allocation24_spill]] %s2462_s18  ;;  %2005 = vmatprep.subr.mxu1 %v751_v5 }
  0x3e   :  { %s2486_s4 = sld [smem:[#allocation3 + $0x2f]] }
  0x3f   :  { %s2496_s19 = sld [smem:[#allocation3 + $0x41]] }
  0x40   :  { %s2498_s21 = sld [smem:[#allocation3 + $0x3]] }
  0x41   :  { %4125 = sst [smem:[#allocation25_spill]] %s2470_s24 }
  0x42   :  { %4126 = sst [smem:[#allocation26_spill]] %s2478_s3 }
  0x43   :  { %s2494_s3 = sld [smem:[#allocation3 + $0x38]] }
  0x44   :  { %4127 = sst [smem:[#allocation27_spill]] %s2486_s4 }
  0x45   :  { %4129 = sst [smem:[#allocation29_spill]] %s2496_s19 }
  0x46   :  { %4130 = sst [smem:[#allocation30_spill]] %s2498_s21 }
  0x47   :  { %s2500_s0 = sld [smem:[#allocation3 + $0xc]] }
  0x48   :  { %s2502_s23 = sld [smem:[#allocation3 + $0x15]] }
  0x49   :  { %4128 = sst [smem:[#allocation28_spill]] %s2494_s3 }
  0x4a   :  { %s2504_s4 = sld [smem:[#allocation3 + $0x1e]] }
  0x4b   :  { %s2506_s27 = sld [smem:[#allocation3 + $0x27]] }
  0x4c   :  { %s2508_s1 = sld [smem:[#allocation3 + $0x30]] }
  0x4d   :  { %4131 = sst [smem:[#allocation31_spill]] %s2500_s0 }
  0x4e   :  { %4132 = sst [smem:[#allocation32_spill]] %s2502_s23 }
  0x4f   :  { %s2510_s28 = sld [smem:[#allocation3 + $0x39]] }
  0x50   :  { %4133 = sst [smem:[#allocation33_spill]] %s2504_s4 }
  0x51   :  { %4134 = sst [smem:[#allocation34_spill]] %s2506_s27 }
  0x52   :  { %4135 = sst [smem:[#allocation35_spill]] %s2508_s1 }
  0x53   :  { %s2518_s21 = sld [smem:[#allocation3 + $0x42]] }
  0x54   :  { %s2542_s0 = sld [smem:[#allocation3 + $0xd]] }
  0x55   :  { %4136 = sst [smem:[#allocation36_spill]] %s2510_s28 }
  0x56   :  { %s2526_s28 = sld [smem:[#allocation3 + $0x4]] }
  0x57   :  { %s2609_s3 = sld [smem:[#allocation3 + $0x31]] }
  0x58   :  { %s2620_s27 = sld [smem:[#allocation3 + $0x32]] }
  0x59   :  { %4137 = sst [smem:[#allocation37_spill]] %s2518_s21 }
  0x5a   :  { %s2534_s21 = sld [smem:[#allocation3 + $0x5]] }
  0x5b   :  { %4140 = sst [smem:[#allocation40_spill]] %s2542_s0 }
  0x5c   :  { %4138 = sst [smem:[#allocation38_spill]] %s2526_s28 }
  0x5d   :  { %s2558_s0 = sld [smem:[#allocation3 + $0x16]] }
  0x5e   :  { %4148 = sst [smem:[#allocation48_spill]] %s2609_s3 }
  0x5f   :  { %4149 = sst [smem:[#allocation49_spill]] %s2620_s27 }
  0x60   :  { %4139 = sst [smem:[#allocation39_spill]] %s2534_s21 }
  0x61   :  { %s2550_s21 = sld [smem:[#allocation3 + $0xe]] }
  0x62   :  { %s2642_s3 = sld [smem:[#allocation3 + $0x3b]] }
  0x63   :  { %4142 = sst [smem:[#allocation42_spill]] %s2558_s0 }
  0x64   :  { %s2574_s0 = sld [smem:[#allocation3 + $0x1f]] }
  0x65   :  { %s2650_s19 = sld [smem:[#allocation3 + $0x43]] }
  0x66   :  { %s2658_s28 = sld [smem:[#allocation3 + $0x44]] }
  0x67   :  { %4141 = sst [smem:[#allocation41_spill]] %s2550_s21 }
  0x68   :  { %s2566_s21 = sld [smem:[#allocation3 + $0x17]] }
  0x69   :  { %4151 = sst [smem:[#allocation51_spill]] %s2642_s3 }
  0x6a   :  { %4144 = sst [smem:[#allocation44_spill]] %s2574_s0 }
  0x6b   :  { %s2590_s0 = sld [smem:[#allocation3 + $0x28]]  ;;  %v570_v63 = vstv %s2650_s19 }
  0x6c   :  { %4152 = sst [smem:[#allocation52_spill]] %s2658_s28 }
  0x6d   :  { %s2660_s1 = sld [smem:[#allocation3 + $0x6]] }
  0x6e   :  { %4143 = sst [smem:[#allocation43_spill]] %s2566_s21 }
  0x6f   :  { %s2582_s21 = sld [smem:[#allocation3 + $0x20]] }
  0x70   :  { %s2664_s29 = sld [smem:[#allocation3 + $0x18]] }
  0x71   :  { %4146 = sst [smem:[#allocation46_spill]] %s2590_s0 }
  0x72   :  { %s2666_s24 = sld [smem:[#allocation3 + $0x21]] }
  0x73   :  { %s2668_s27 = sld [smem:[#allocation3 + $0x2a]] }
  0x74   :  { %s2670_s4 = sld [smem:[#allocation3 + $0x33]] }
  0x75   :  { %4145 = sst [smem:[#allocation45_spill]] %s2582_s21 }
  0x76   :  { %s2598_s21 = sld [smem:[#allocation3 + $0x29]] }
  0x77   :  { %4154 = sst [smem:[#allocation54_spill]] %s2664_s29 }
  0x78   :  { %s2672_s23 = sld [smem:[#allocation3 + $0x3c]] }
  0x79   :  { %4155 = sst [smem:[#allocation55_spill]] %s2668_s27 }
  0x7a   :  { %4156 = sst [smem:[#allocation56_spill]] %s2670_s4 }
  0x7b   :  { %s2676_s0 = sld [smem:[#allocation3 + $0x45]] }
  0x7c   :  { %4147 = sst [smem:[#allocation47_spill]] %s2598_s21 }
  0x7d   :  { %s2631_s21 = sld [smem:[#allocation3 + $0x3a]] }
  0x7e   :  { %4157 = sst [smem:[#allocation57_spill]] %s2672_s23 }
  0x7f   :  { %s2678_s2 = sld [smem:[#allocation3 + $0x7]] }
  0x80   :  { %s2680_s29 = sld [smem:[#allocation3 + $0x10]] }
  0x81   :  { %4158 = sst [smem:[#allocation58_spill]] %s2676_s0 }
  0x82   :  { %s2687_s23 = sld [smem:[#allocation3 + $0x22]] }
  0x83   :  { %4150 = sst [smem:[#allocation50_spill]] %s2631_s21 }
  0x84   :  { %s2662_s21 = sld [smem:[#allocation3 + $0xf]] }
  0x85   :  { %s2689_s4 = sld [smem:[#allocation3 + $0x2b]]  ;;  %v55_v40 = vpop.permute.xlu1 %54 }
  0x86   :  { %s2691_s0 = sld [smem:[#allocation3 + $0x34]] }
  0x87   :  { %s2693_s27 = sld [smem:[#allocation3 + $0x3d]] }
  0x88   :  { %4160 = sst [smem:[#allocation60_spill]] %s2687_s23 }
  0x89   :  { %s2699_s23 = sld [smem:[#allocation3 + $0x46]]  ;;  %v57_v46 = vpop.permute.xlu1 %56 }
  0x8a   :  { %4153 = sst [smem:[#allocation53_spill]] %s2662_s21  ;;  %v59_v41 = vsel %vm58_vm0, %v55_v40, %v57_v46  ;;  %v60_v38 = vsel %vm58_vm0, %v57_v46, %v55_v40  ;;  %vm120_vm0 = vcmp.lt.s32.totalorder %v2674_v7, 111 }
  0x8b   :  { %s2682_s21 = sld [smem:[#allocation3 + $0x19]]  ;;  %v61_v49 = vsel %vm2811_vm2, %v60_v38, 0.0  ;;  %v134_v43 = vmul.f32 %v132_v10, %v59_v41  ;;  %v194_v44 = vmul.f32 %v192_v13, %v59_v41  ;;  %v254_v58 = vmul.f32 %v252_v14, %v59_v41 }
  0x8c   :  { %4161 = sst [smem:[#allocation61_spill]] %s2689_s4  ;;  %v193_v38 = vmul.f32 %v192_v13, %v61_v49  ;;  %v253_v46 = vmul.f32 %v252_v14, %v61_v49  ;;  %v314_v11 = vmul.f32 %v312_v15, %v59_v41  ;;  %v373_v42 = vmul.f32 %v372_v16, %v61_v49 }
  0x8d   :  { %4162 = sst [smem:[#allocation62_spill]] %s2691_s0  ;;  %v433_v13 = vmul.f32 %v432_v17, %v61_v49  ;;  %v66_v14 = vpop.permute.xlu1 %65  ;;  %v493_v4 = vmul.f32 %v492_v18, %v61_v49  ;;  %v494_v53 = vmul.f32 %v492_v18, %v59_v41  ;;  %v553_v37 = vmul.f32 %v552_v19, %v61_v49 }
  0x8e   :  { %4163 = sst [smem:[#allocation63_spill]] %s2693_s27  ;;  %v554_v35 = vmul.f32 %v552_v19, %v59_v41  ;;  %vm2309_vm2 = vmmov 0  }
  0x8f   :  { %4164 = sst [smem:[#allocation64_spill]] %s2699_s23 }
  0x90   :  { %s2705_s27 = sld [smem:[#allocation3 + $0x8]] }
  0x91   :  { %4159 = sst [smem:[#allocation59_spill]] %s2682_s21 }
  0x92   :  { %s2711_s4 = sld [smem:[#allocation3 + $0x48]] }
  0x93   :  { %s4172_s26 = sld [smem:[#allocation38_spill]] }
  0x94   :  { %s2717_s30 = sld [smem:[#allocation3 + $0x11]] }
  0x95   :  { %s4176_s6 = sld [smem:[#allocation40_spill]] }
  0x96   :  { %4165 = sst [smem:[#allocation65_spill]] %s2705_s27 }
  0x97   :  { %s2723_s8 = sld [smem:[#allocation3 + $0x49]] }
  0x98   :  { %4168 = sst [smem:[#allocation66_spill]] %s2711_s4 }
  0x99   :  { %s2729_s9 = sld [smem:[#allocation3 + $0x1a]]  ;;  %v150_v36 = vstv %s4172_s26 }
  0x9a   :  { %4173 = sst [smem:[#allocation38_spill]] %s2717_s30  ;;  %v2752_v47 = vmul.f32 %v150_v36, %v2350_v1  ;;  %v2763_v52 = vmul.f32 %v150_v36, %v2343_v0 }
  0x9b   :  { %s4183_s11 = sld [smem:[#allocation42_spill]]  ;;  %v210_v39 = vstv %s4176_s6 }
  0x9c   :  { %s2735_s15 = sld [smem:[#allocation3 + $0x4a]]  ;;  %v2759_v50 = vmul.f32 %v210_v39, %v2350_v1  ;;  %v2771_v56 = vmul.f32 %v210_v39, %v2343_v0  ;;  %v2832_v39 = vmul.f32 %v570_v63, %v2350_v1 }
  0x9d   :  { %s4185_s16 = sld [smem:[#allocation44_spill]] }
  0x9e   :  { %s2741_s12 = sld [smem:[#allocation3 + $0x23]]  ;;  %4195 = vst [vmem:[#allocation67_spill] sm:$0xff] %v2771_v56 }
  0x9f   :  { %s4187_s18 = sld [smem:[#allocation46_spill]] }
  0xa0   :  { %s4188_s23 = sld [smem:[#allocation48_spill]] }
  0xa1   :  { %s2747_s22 = sld [smem:[#allocation3 + $0x4b]]  ;;  %v270_v48 = vstv %s4183_s11 }
  0xa2   :  { %s4191_s5 = sld [smem:[#allocation50_spill]]  ;;  %v2776_v57 = vmul.f32 %v270_v48, %v2350_v1  ;;  %v2781_v60 = vmul.f32 %v270_v48, %v2343_v0 }
  0xa3   :  { %s2755_s6 = sld [smem:[#allocation3 + $0x2c]]  ;;  %v330_v51 = vstv %s4185_s16 }
  0xa4   :  { %s2765_s30 = sld [smem:[#allocation3 + $0x4c]]  ;;  %4197 = vst [vmem:[#allocation68_spill] sm:$0xff] %v2781_v60  ;;  %v2786_v61 = vmul.f32 %v330_v51, %v2350_v1  ;;  %v2791_v2 = vmul.f32 %v330_v51, %v2343_v0 }
  0xa5   :  { %v390_v54 = vstv %s4187_s18  ;;  %s2773_s11 = sld [smem:[#allocation3 + $0x35]] }
  0xa6   :  { %v450_v55 = vstv %s4188_s23  ;;  %s2783_s13 = sld [smem:[#allocation3 + $0x4d]]  ;;  %4199 = vst [vmem:[#allocation69_spill] sm:$0xff] %v2791_v2  ;;  %v2798_v3 = vmul.f32 %v390_v54, %v2350_v1  ;;  %v2805_v6 = vmul.f32 %v390_v54, %v2343_v0 }
  0xa7   :  { %4189 = sst [smem:[#allocation40_spill]] %s2747_s22  ;;  %v2802_v5 = vmul.f32 %v450_v55, %v2350_v1  ;;  %v2821_v54 = vmul.f32 %v450_v55, %v2343_v0  ;;  %v2839_v55 = vmul.f32 %v570_v63, %v2343_v0 }
  0xa8   :  { %v510_v59 = vstv %s4191_s5  ;;  %s2793_s18 = sld [smem:[#allocation3 + $0x3e]]  ;;  %4201 = vst [vmem:[#allocation70_spill] sm:$0xff] %v2805_v6 }
  0xa9   :  { %s4200_s5 = sld [smem:[#allocation53_spill]]  ;;  %v2817_v48 = vmul.f32 %v510_v59, %v2350_v1  ;;  %4210 = vst [vmem:[#allocation71_spill] sm:$0xff] %v2821_v54  ;;  %v2836_v51 = vmul.f32 %v510_v59, %v2343_v0  ;;  %4216 = vst [vmem:[#allocation73_spill] sm:$0xff] %v2839_v55  ;;  %v40_v1 = vpop.permute.xlu0 %39 }
  0xaa   :  { %4193 = sst [smem:[#allocation42_spill]] %s2765_s30 }
  0xab   :  { %s4202_s19 = sld [smem:[#allocation54_spill]]  ;;  %4214 = vst [vmem:[#allocation72_spill] sm:$0xff] %v2836_v51 }
  0xac   :  { %4198 = sst [smem:[#allocation44_spill]] %s2783_s13 }
  0xad   :  { %s2807_s23 = sld [smem:[#allocation3 + $0x4e]]  ;;  %v42_v45 = vpop.permute.xlu0 %41 }
  0xae   :  { %s4206_s7 = sld [smem:[#allocation55_spill]]  ;;  %v44_v62 = vsel %vm43_vm1, %v40_v1, %v42_v45  ;;  %v45_v63 = vsel %vm43_vm1, %v42_v45, %v40_v1  ;;  %v133_v45 = vmul.f32 %v132_v10, %v61_v49  ;;  %v313_v1 = vmul.f32 %v312_v15, %v61_v49 }
  0xaf   :  { %s4207_s10 = sld [smem:[#allocation56_spill]]  ;;  %v374_v10 = vmul.f32 %v372_v16, %v59_v41  ;;  %v434_v16 = vmul.f32 %v432_v17, %v59_v41  ;;  %v52_v12 = vsel %vm50_vm7, %v45_v63, 0.0  ;;  %v53_v34 = vsel %vm2853_vm4, %v44_v62, 0.0 }
  0xb0   :  { %s4208_s26 = sld [smem:[#allocation57_spill]]  ;;  %v129_v32 = vmul.f32 %v128_v20, %v52_v12  ;;  %v130_v17 = vmul.f32 %v128_v20, %v53_v34  ;;  %v189_v31 = vmul.f32 %v188_v21, %v52_v12  ;;  %v190_v18 = vmul.f32 %v188_v21, %v53_v34 }
  0xb1   :  { %s2823_s25 = sld [smem:[#allocation3 + $0x47]]  ;;  %v64_v15 = vpop.permute.xlu0 %63  ;;  %v249_v19 = vmul.f32 %v248_v22, %v52_v12  ;;  %v250_v41 = vmul.f32 %v248_v22, %v53_v34  ;;  %v309_v49 = vmul.f32 %v308_v23, %v52_v12  ;;  %v310_v62 = vmul.f32 %v308_v23, %v53_v34 }
  0xb2   :  { %s2841_s16 = sld [smem:[#allocation3 + $0x4f]]  ;;  %v68_v33 = vsel %vm67_vm5, %v64_v15, %v66_v14  ;;  %v135_v20 = vadd.f32 %v133_v45, %v129_v32  ;;  %v136_v63 = vadd.f32 %v134_v43, %v130_v17  ;;  %v195_v30 = vadd.f32 %v193_v38, %v189_v31  ;;  %v79_v45 = vpop.permute.xlu1 %78 }
  0xb3   :  { %4203 = sst [smem:[#allocation46_spill]] %s2807_s23  ;;  %v196_v29 = vadd.f32 %v194_v44, %v190_v18  ;;  %v255_v28 = vadd.f32 %v253_v46, %v249_v19  ;;  %v256_v27 = vadd.f32 %v254_v58, %v250_v41  ;;  %v315_v21 = vadd.f32 %v313_v1, %v309_v49 }
  0xb4   :  { %s4219_s14 = sld [smem:[#allocation62_spill]]  ;;  %v316_v26 = vadd.f32 %v314_v11, %v310_v62  ;;  %v369_v25 = vmul.f32 %v368_v24, %v52_v12  ;;  %v370_v55 = vmul.f32 %v368_v24, %v53_v34  ;;  %vm1805_vm7 = vcmask 554496  }
  0xb5   :  { %s4220_s27 = sld [smem:[#allocation63_spill]]  ;;  %v77_v58 = vpop.permute.xlu0 %76 }
  0xb6   :  { %s4221_s17 = sld [smem:[#allocation64_spill]]  ;;  %v375_v38 = vadd.f32 %v373_v42, %v369_v25  ;;  %v376_v46 = vadd.f32 %v374_v10, %v370_v55  ;;  %v69_v42 = vsel %vm67_vm5, %v66_v14, %v64_v15  ;;  %v81_v36 = vsel %vm80_vm9, %v77_v58, %v79_v45 }
  0xb7   :  { %4211 = sst [smem:[#allocation48_spill]] %s2823_s25  ;;  %v74_v55 = vsel %vm72_vm10, %v69_v42, 0.0  ;;  %vm1799_vm5 = vcmask 521472  }
  0xb8   :  { %4217 = sst [smem:[#allocation50_spill]] %s2841_s16 }
  0xb9   :  { %s4222_s28 = sld [smem:[#allocation65_spill]] }
  0xba   :  { %s4223_s25 = sld [smem:[#allocation38_spill]] }
  0xbb   :  { %s4226_s0 = sld [smem:[#allocation48_spill]] }
  0xbc   :  { %s4244_s13 = sld [smem:[#allocation19_spill]] }
  0xbd   :  { %s4245_s4 = sld [smem:[#allocation20_spill]] }
  0xbe   :  { %s4246_s16 = sld [smem:[#allocation21_spill]] }
  0xbf   :  { %s4253_s30 = sld [smem:[#allocation22_spill]] }
  0xc0   :  { %s4254_s23 = sld [smem:[#allocation23_spill]] }
  0xc1   :  { %s4255_s3 = sld [smem:[#allocation24_spill]] }
  0xc2   :  { %v4247_v22 = vstv %s4244_s13  ;;  %s4256_s20 = sld [smem:[#allocation25_spill]] }
  0xc3   :  { %v429_v51 = vmul.f32 %v4247_v22, %v52_v12  ;;  %v4248_v54 = vmov %v4247_v22  ;;  %v4249_v2 = vstv %s4245_s4  ;;  %s4259_s21 = sld [smem:[#allocation26_spill]] }
  0xc4   :  { %v430_v6 = vmul.f32 %v4248_v54, %v53_v34  ;;  %v489_v60 = vmul.f32 %v4249_v2, %v52_v12  ;;  %v4250_v23 = vmov %v4249_v2  ;;  %v4251_v32 = vstv %s4246_s16  ;;  %s4262_s22 = sld [smem:[#allocation27_spill]] }
  0xc5   :  { %v490_v56 = vmul.f32 %v4250_v23, %v53_v34  ;;  %v549_v43 = vmul.f32 %v4251_v32, %v52_v12  ;;  %v4252_v31 = vmov %v4251_v32  ;;  %v435_v24 = vadd.f32 %v433_v13, %v429_v51  ;;  %s4265_s13 = sld [smem:[#allocation28_spill]] }
  0xc6   :  { %v550_v44 = vmul.f32 %v4252_v31, %v53_v34  ;;  %v436_v1 = vadd.f32 %v434_v16, %v430_v6  ;;  %v495_v34 = vadd.f32 %v493_v4, %v489_v60  ;;  %v75_v6 = vsel %vm2926_vm8, %v68_v33, 0.0  ;;  %s4267_s4 = sld [smem:[#allocation29_spill]] }
  0xc7   :  { %v496_v2 = vadd.f32 %v494_v53, %v490_v56  ;;  %v555_v54 = vadd.f32 %v553_v37, %v549_v43  ;;  %v82_v51 = vsel %vm80_vm9, %v79_v45, %v77_v58  ;;  %v4257_v11 = vstv %s4253_s30  ;;  %s4276_s16 = sld [smem:[#allocation30_spill]] }
  0xc8   :  { %v556_v25 = vadd.f32 %v554_v35, %v550_v44  ;;  %v140_v10 = vmul.f32 %v4257_v11, %v75_v6  ;;  %v4258_v60 = vstv %s4254_s23  ;;  %v4260_v35 = vstv %s4255_s3  ;;  %s4277_s30 = sld [smem:[#allocation31_spill]] }
  0xc9   :  { %v200_v37 = vmul.f32 %v4258_v60, %v75_v6  ;;  %v260_v53 = vmul.f32 %v4260_v35, %v75_v6  ;;  %v4261_v56 = vmov %v4257_v11  ;;  %v4263_v13 = vmov %v4258_v60  ;;  %s4278_s23 = sld [smem:[#allocation32_spill]] }
  0xca   :  { %v139_v4 = vmul.f32 %v4261_v56, %v74_v55  ;;  %v199_v33 = vmul.f32 %v4263_v13, %v74_v55  ;;  %v4264_v14 = vmov %v4260_v35  ;;  %v4266_v16 = vstv %s4256_s20  ;;  %s4280_s3 = sld [smem:[#allocation33_spill]] }
  0xcb   :  { %v259_v15 = vmul.f32 %v4264_v14, %v74_v55  ;;  %v319_v12 = vmul.f32 %v4266_v16, %v74_v55  ;;  %v142_v17 = vadd.f32 %v140_v10, %v136_v63  ;;  %v202_v18 = vadd.f32 %v200_v37, %v196_v29  ;;  %s4283_s20 = sld [smem:[#allocation34_spill]] }
  0xcc   :  { %v262_v19 = vadd.f32 %v260_v53, %v256_v27  ;;  %v4268_v41 = vmov %v4266_v16  ;;  %v141_v62 = vadd.f32 %v139_v4, %v135_v20  ;;  %v201_v22 = vadd.f32 %v199_v33, %v195_v30  ;;  %v88_v30 = vpop.permute.xlu1 %87 }
  0xcd   :  { %v320_v49 = vmul.f32 %v4268_v41, %v75_v6  ;;  %v261_v23 = vadd.f32 %v259_v15, %v255_v28  ;;  %v321_v32 = vadd.f32 %v319_v12, %v315_v21  ;;  %v4269_v31 = vstv %s4259_s21  ;;  %v86_v28 = vpop.permute.xlu0 %85  ;;  %s4286_s21 = sld [smem:[#allocation35_spill]] }
  0xce   :  { %v379_v44 = vmul.f32 %v4269_v31, %v74_v55  ;;  %v4270_v45 = vmov %v4269_v31  ;;  %v4271_v42 = vstv %s4262_s22  ;;  %v4273_v56 = vstv %s4265_s13  ;;  %s4289_s22 = sld [smem:[#allocation36_spill]] }
  0xcf   :  { %v322_v43 = vadd.f32 %v320_v49, %v316_v26  ;;  %v380_v58 = vmul.f32 %v4270_v45, %v75_v6  ;;  %v439_v11 = vmul.f32 %v4271_v42, %v74_v55  ;;  %v4272_v60 = vmov %v4271_v42  ;;  %s4292_s13 = sld [smem:[#allocation37_spill]] }
  0xd0   :  { %v440_v35 = vmul.f32 %v4272_v60, %v75_v6  ;;  %v499_v63 = vmul.f32 %v4273_v56, %v74_v55  ;;  %v4274_v29 = vmov %v4273_v56  ;;  %v4275_v10 = vstv %s4267_s4  ;;  %s4304_s4 = sld [smem:[#allocation39_spill]] }
  0xd1   :  { %v500_v27 = vmul.f32 %v4274_v29, %v75_v6  ;;  %v559_v20 = vmul.f32 %v4275_v10, %v74_v55  ;;  %v381_v26 = vadd.f32 %v379_v44, %v375_v38  ;;  %v382_v21 = vadd.f32 %v380_v58, %v376_v46 }
  0xd2   :  { %v441_v37 = vadd.f32 %v439_v11, %v435_v24  ;;  %v4279_v53 = vmov %v4275_v10  ;;  %v442_v13 = vadd.f32 %v440_v35, %v436_v1  ;;  %v501_v33 = vadd.f32 %v499_v63, %v495_v34 }
  0xd3   :  { %v560_v4 = vmul.f32 %v4279_v53, %v75_v6  ;;  %v502_v14 = vadd.f32 %v500_v27, %v496_v2  ;;  %v561_v15 = vadd.f32 %v559_v20, %v555_v54  ;;  %v83_v55 = vsel %vm2827_vm3, %v82_v51, 0.0 }
  0xd4   :  { %v84_v12 = vsel %vm2853_vm4, %v81_v36, 0.0  ;;  %v90_v38 = vsel %vm89_vm11, %v86_v28, %v88_v30  ;;  %v4281_v46 = vstv %s4276_s16  ;;  %v4284_v49 = vstv %s4277_s30  ;;  %s4305_s16 = sld [smem:[#allocation41_spill]] }
  0xd5   :  { %v562_v16 = vadd.f32 %v560_v4, %v556_v25  ;;  %v145_v24 = vmul.f32 %v4281_v46, %v83_v55  ;;  %v4282_v41 = vmov %v4281_v46  ;;  %v205_v1 = vmul.f32 %v4284_v49, %v83_v55  ;;  %s4306_s30 = sld [smem:[#allocation43_spill]] }
  0xd6   :  { %v146_v6 = vmul.f32 %v4282_v41, %v84_v12  ;;  %v4285_v34 = vmov %v4284_v49  ;;  %v4287_v54 = vstv %s4278_s23  ;;  %v4290_v31 = vstv %s4280_s3  ;;  %s4307_s23 = sld [smem:[#allocation45_spill]] }
  0xd7   :  { %v206_v2 = vmul.f32 %v4285_v34, %v84_v12  ;;  %v265_v25 = vmul.f32 %v4287_v54, %v83_v55  ;;  %v4288_v51 = vmov %v4287_v54  ;;  %v325_v44 = vmul.f32 %v4290_v31, %v83_v55  ;;  %s4313_s3 = sld [smem:[#allocation47_spill]] }
  0xd8   :  { %v266_v36 = vmul.f32 %v4288_v51, %v84_v12  ;;  %v4291_v45 = vmov %v4290_v31  ;;  %v147_v42 = vadd.f32 %v145_v24, %v141_v62  ;;  %v148_v11 = vadd.f32 %v146_v6, %v142_v17 }
  0xd9   :  { %v326_v58 = vmul.f32 %v4291_v45, %v84_v12  ;;  %v207_v60 = vadd.f32 %v205_v1, %v201_v22  ;;  %v208_v35 = vadd.f32 %v206_v2, %v202_v18  ;;  %v267_v56 = vadd.f32 %v265_v25, %v261_v23 }
  0xda   :  { %v268_v63 = vadd.f32 %v266_v36, %v262_v19  ;;  %v327_v29 = vadd.f32 %v325_v44, %v321_v32  ;;  %v4293_v10 = vstv %s4283_s20  ;;  %v4295_v46 = vstv %s4286_s21  ;;  %s4317_s20 = sld [smem:[#allocation49_spill]] }
  0xdb   :  { %v328_v27 = vadd.f32 %v326_v58, %v322_v43  ;;  %v385_v20 = vmul.f32 %v4293_v10, %v83_v55  ;;  %v4294_v53 = vmov %v4293_v10  ;;  %v445_v41 = vmul.f32 %v4295_v46, %v83_v55  ;;  %v97_v58 = vpop.permute.xlu1 %96  ;;  %s4320_s21 = sld [smem:[#allocation51_spill]] }
  0xdc   :  { %v386_v4 = vmul.f32 %v4294_v53, %v84_v12  ;;  %v4296_v49 = vmov %v4295_v46  ;;  %v4297_v54 = vstv %s4289_s22  ;;  %v4299_v62 = vstv %s4292_s13  ;;  %s4327_s22 = sld [smem:[#allocation52_spill]] }
  0xdd   :  { %v446_v34 = vmul.f32 %v4296_v49, %v84_v12  ;;  %v505_v51 = vmul.f32 %v4297_v54, %v83_v55  ;;  %v4298_v31 = vmov %v4297_v54  ;;  %v565_v17 = vmul.f32 %v4299_v62, %v83_v55 }
  0xde   :  { %v506_v45 = vmul.f32 %v4298_v31, %v84_v12  ;;  %v4300_v22 = vmov %v4299_v62  ;;  %v387_v23 = vadd.f32 %v385_v20, %v381_v26  ;;  %v388_v19 = vadd.f32 %v386_v4, %v382_v21  ;;  %v4318_v20 = vld [vmem:[#allocation69_spill] sm:$0xff] }
  0xdf   :  { %v566_v18 = vmul.f32 %v4300_v22, %v84_v12  ;;  %v447_v32 = vadd.f32 %v445_v41, %v441_v37  ;;  %v448_v43 = vadd.f32 %v446_v34, %v442_v13  ;;  %v507_v24 = vadd.f32 %v505_v51, %v501_v33 }
  0xe0   :  { %v508_v6 = vadd.f32 %v506_v45, %v502_v14  ;;  %v567_v1 = vadd.f32 %v565_v17, %v561_v15  ;;  %v4301_v25 = vshrl.u32 %v2685_v8, 4  ;;  %v154_v44 = vadd.f32 %v2752_v47, %v148_v11  ;;  %v4322_v45 = vld [vmem:[#allocation70_spill] sm:$0xff] }
  0xe1   :  { %v568_v2 = vadd.f32 %v566_v18, %v562_v16  ;;  %v214_v55 = vadd.f32 %v2759_v50, %v208_v35  ;;  %v274_v26 = vadd.f32 %v2776_v57, %v268_v63  ;;  %v334_v21 = vadd.f32 %v2786_v61, %v328_v27  ;;  %v4308_v61 = vld [vmem:[#allocation67_spill] sm:$0xff]  ;;  %v4311_v16 = vld [vmem:[#allocation68_spill] sm:$0xff] }
  0xe2   :  { %vm3062_vm12 = vcmp.le.s32.totalorder %v4301_v25, 14  ;;  %v394_v37 = vadd.f32 %v2798_v3, %v388_v19  ;;  %v454_v13 = vadd.f32 %v2802_v5, %v448_v43  ;;  %v514_v8 = vadd.f32 %v2817_v48, %v508_v6  ;;  %v4325_v43 = vld [vmem:[#allocation71_spill] sm:$0xff] }
  0xe3   :  { %v574_v33 = vadd.f32 %v2832_v39, %v568_v2  ;;  %v91_v47 = vsel %vm89_vm11, %v88_v30, %v86_v28  ;;  %v92_v50 = vsel %vm2900_vm6, %v90_v38, 0.0  ;;  %v153_v57 = vadd.f32 %v2763_v52, %v147_v42  ;;  %v95_v30 = vpop.permute.xlu0 %94  ;;  %vm104_vm15 = vmand %vm3062_vm12, %vm2853_vm4 }
  0xe4   :  { %v213_v3 = vadd.f32 %v4308_v61, %v207_v60  ;;  %v93_v5 = vsel %vm2926_vm8, %v91_v47, 0.0  ;;  %v4309_v39 = vstv %s4304_s4  ;;  %v4310_v14 = vstv %s4305_s16  ;;  %v4329_v47 = vld [vmem:[#allocation72_spill] sm:$0xff]  ;;  %vm124_vm1 = vmand %vm3062_vm12, %vm2926_vm8 }
  0xe5   :  { %v157_v48 = vmul.f32 %v4309_v39, %v92_v50  ;;  %v217_v15 = vmul.f32 %v4310_v14, %v92_v50  ;;  %v273_v12 = vadd.f32 %v4311_v16, %v267_v56  ;;  %v4312_v28 = vmov %v4309_v39  ;;  %v110_v39 = vpop.permute.xlu1 %109 }
  0xe6   :  { %v158_v38 = vmul.f32 %v4312_v28, %v93_v5  ;;  %v4314_v11 = vmov %v4310_v14  ;;  %v4315_v42 = vstv %s4306_s30  ;;  %v333_v53 = vadd.f32 %v4318_v20, %v327_v29  ;;  %s2310_s30 = smov 32  }
  0xe7   :  { %v218_v52 = vmul.f32 %v4314_v11, %v93_v5  ;;  %v277_v60 = vmul.f32 %v4315_v42, %v92_v50  ;;  %v4316_v35 = vmov %v4315_v42  ;;  %v159_v27 = vadd.f32 %v157_v48, %v153_v57 }
  0xe8   :  { %v278_v63 = vmul.f32 %v4316_v35, %v93_v5  ;;  %v219_v10 = vadd.f32 %v217_v15, %v213_v3  ;;  %v4319_v4 = vstv %s4307_s23  ;;  %v160_v46 = vadd.f32 %v158_v38, %v154_v44 }
  0xe9   :  { %v337_v56 = vmul.f32 %v4319_v4, %v92_v50  ;;  %v220_v41 = vadd.f32 %v218_v52, %v214_v55  ;;  %v279_v49 = vadd.f32 %v277_v60, %v273_v12  ;;  %v4321_v54 = vmov %v4319_v4 }
  0xea   :  { %v280_v34 = vadd.f32 %v278_v63, %v274_v26  ;;  %v338_v51 = vmul.f32 %v4321_v54, %v93_v5  ;;  %v393_v62 = vadd.f32 %v4322_v45, %v387_v23  ;;  %v4323_v17 = vstv %s4313_s3  ;;  %v108_v23 = vpop.permute.xlu0 %107 }
  0xeb   :  { %v339_v31 = vadd.f32 %v337_v56, %v333_v53  ;;  %v397_v22 = vmul.f32 %v4323_v17, %v92_v50  ;;  %v4324_v18 = vmov %v4323_v17  ;;  %v453_v6 = vadd.f32 %v4325_v43, %v447_v32 }
  0xec   :  { %v398_v19 = vmul.f32 %v4324_v18, %v93_v5  ;;  %v4326_v29 = vstv %s4317_s20  ;;  %v340_v55 = vadd.f32 %v338_v51, %v334_v21  ;;  %v513_v57 = vadd.f32 %v4329_v47, %v507_v24  ;;  %v4332_v24 = vld [vmem:[#allocation73_spill] sm:$0xff] }
  0xed   :  { %v457_v2 = vmul.f32 %v4326_v29, %v92_v50  ;;  %v4328_v25 = vmov %v4326_v29  ;;  %v399_v26 = vadd.f32 %v397_v22, %v393_v62  ;;  %v4330_v61 = vstv %s4320_s21 }
  0xee   :  { %v458_v44 = vmul.f32 %v4328_v25, %v93_v5  ;;  %v517_v3 = vmul.f32 %v4330_v61, %v92_v50  ;;  %v400_v48 = vadd.f32 %v398_v19, %v394_v37  ;;  %v4331_v16 = vmov %v4330_v61 }
  0xef   :  { %v459_v14 = vadd.f32 %v457_v2, %v453_v6  ;;  %v518_v32 = vmul.f32 %v4331_v16, %v93_v5  ;;  %v573_v12 = vadd.f32 %v4332_v24, %v567_v1  ;;  %v4333_v28 = vstv %s4327_s22 }
  0xf0   :  { %v460_v15 = vadd.f32 %v458_v44, %v454_v13  ;;  %v519_v21 = vadd.f32 %v517_v3, %v513_v57  ;;  %v577_v37 = vmul.f32 %v4333_v28, %v92_v50  ;;  %v4334_v38 = vmov %v4333_v28 }
  0xf1   :  { %v578_v13 = vmul.f32 %v4334_v38, %v93_v5  ;;  %v520_v11 = vadd.f32 %v518_v32, %v514_v8  ;;  %v99_v0 = vsel %vm98_vm13, %v95_v30, %v97_v58  ;;  %v100_v52 = vsel %vm98_vm13, %v97_v58, %v95_v30 }
  0xf2   :  { %v3132_v42 = vsel %vm111_vm14, %v108_v23, %v110_v39  ;;  %v579_v60 = vadd.f32 %v577_v37, %v573_v12  ;;  %v105_v50 = vsel %vm2827_vm3, %v99_v0, 0.0  ;;  %v106_v35 = vsel %vm104_vm15, %v100_v52, 0.0 }
  0xf3   :  { %v580_v1 = vadd.f32 %v578_v13, %v574_v33  ;;  %v4335_v63 = vstv %s2660_s1  ;;  %v4337_v53 = vstv %s4200_s5  ;;  %v4339_v30 = vstv %s4202_s19  ;;  %s4343_s1 = sld [smem:[#allocation58_spill]] }
  0xf4   :  { %v163_v5 = vmul.f32 %v4335_v63, %v105_v50  ;;  %v4336_v20 = vmov %v4335_v63  ;;  %v223_v4 = vmul.f32 %v4337_v53, %v105_v50  ;;  %v4338_v56 = vmov %v4337_v53  ;;  %s4352_s5 = sld [smem:[#allocation60_spill]] }
  0xf5   :  { %v164_v8 = vmul.f32 %v4336_v20, %v106_v35  ;;  %v224_v58 = vmul.f32 %v4338_v56, %v106_v35  ;;  %v283_v54 = vmul.f32 %v4339_v30, %v105_v50  ;;  %v4340_v51 = vmov %v4339_v30  ;;  %s4354_s19 = sld [smem:[#allocation61_spill]] }
  0xf6   :  { %v284_v33 = vmul.f32 %v4340_v51, %v106_v35  ;;  %v4341_v45 = vstv %s2666_s24  ;;  %v165_v22 = vadd.f32 %v163_v5, %v159_v27  ;;  %v225_v19 = vadd.f32 %v223_v4, %v219_v10  ;;  %s4349_s24 = sld [smem:[#allocation59_spill]] }
  0xf7   :  { %v343_v9 = vmul.f32 %v4341_v45, %v105_v50  ;;  %v4342_v62 = vmov %v4341_v45  ;;  %v166_v18 = vadd.f32 %v164_v8, %v160_v46  ;;  %v226_v43 = vadd.f32 %v224_v58, %v220_v41 }
  0xf8   :  { %v344_v17 = vmul.f32 %v4342_v62, %v106_v35  ;;  %v285_v6 = vadd.f32 %v283_v54, %v279_v49  ;;  %v286_v29 = vadd.f32 %v284_v33, %v280_v34  ;;  %v4344_v44 = vstv %s4206_s7  ;;  %s4396_s7 = sld [smem:[#allocation44_spill]] }
  0xf9   :  { %v345_v2 = vadd.f32 %v343_v9, %v339_v31  ;;  %v403_v47 = vmul.f32 %v4344_v44, %v105_v50  ;;  %v4345_v57 = vmov %v4344_v44  ;;  %v4346_v3 = vstv %s4207_s10  ;;  %s4409_s10 = sld [smem:[#allocation74_spill]] }
  0xfa   :  { %v346_v25 = vadd.f32 %v344_v17, %v340_v55  ;;  %v404_v61 = vmul.f32 %v4345_v57, %v106_v35  ;;  %v463_v16 = vmul.f32 %v4346_v3, %v105_v50  ;;  %v4347_v32 = vmov %v4346_v3  ;;  %v117_v3 = vpop.permute.xlu0 %116 }
  0xfb   :  { %v464_v24 = vmul.f32 %v4347_v32, %v106_v35  ;;  %v4348_v27 = vstv %s4208_s26  ;;  %v4351_v49 = vstv %s4343_s1  ;;  %v405_v12 = vadd.f32 %v403_v47, %v399_v26 }
  0xfc   :  { %v523_v10 = vmul.f32 %v4348_v27, %v105_v50  ;;  %v4350_v46 = vmov %v4348_v27  ;;  %v583_v34 = vmul.f32 %v4351_v49, %v105_v50  ;;  %v4353_v31 = vmov %v4351_v49 }
  0xfd   :  { %v524_v41 = vmul.f32 %v4350_v46, %v106_v35  ;;  %v584_v55 = vmul.f32 %v4353_v31, %v106_v35  ;;  %v406_v28 = vadd.f32 %v404_v61, %v400_v48  ;;  %v465_v37 = vadd.f32 %v463_v16, %v459_v14 }
  0xfe   :  { %v466_v38 = vadd.f32 %v464_v24, %v460_v15  ;;  %v525_v13 = vadd.f32 %v523_v10, %v519_v21  ;;  %v585_v52 = vadd.f32 %v583_v34, %v579_v60  ;;  %v113_v5 = vsel %vm111_vm14, %v110_v39, %v108_v23 }
  0xff   :  { %v526_v0 = vadd.f32 %v524_v41, %v520_v11  ;;  %v586_v63 = vadd.f32 %v584_v55, %v580_v1  ;;  %v4355_v50 = vstv %s2678_s2  ;;  %v4356_v35 = vstv %s2680_s29  ;;  %s4371_s2 = sld [smem:[#allocation66_spill]] }
 0x100   :  { %v169_v20 = vmul.f32 %v4355_v50, %v3132_v42  ;;  %v229_v26 = vmul.f32 %v4356_v35, %v3132_v42  ;;  %v4357_v48 = vstv %s4349_s24  ;;  %v115_v15 = vsel %vm3062_vm12, %v113_v5, 0.0 }
 0x101   :  { %v289_v14 = vmul.f32 %v4357_v48, %v3132_v42  ;;  %v4358_v21 = vstv %s4352_s5  ;;  %v4359_v60 = vstv %s4354_s19  ;;  %v4360_v39 = vstv %s4219_s14  ;;  %s4400_s14 = sld [smem:[#allocation50_spill]] }
 0x102   :  { %v349_v11 = vmul.f32 %v4358_v21, %v3132_v42  ;;  %v409_v1 = vmul.f32 %v4359_v60, %v3132_v42  ;;  %v469_v23 = vmul.f32 %v4360_v39, %v3132_v42  ;;  %v4361_v8 = vmov %v4355_v50  ;;  %s4410_s5 = sld [smem:[#allocation76_spill]] }
 0x103   :  { %v170_v53 = vmul.f32 %v4361_v8, %v115_v15  ;;  %v171_v4 = vadd.f32 %v169_v20, %v165_v22  ;;  %v4362_v56 = vmov %v4356_v35  ;;  %v231_v30 = vadd.f32 %v229_v26, %v225_v19  ;;  %v119_v22 = vpop.permute.xlu1 %118 }
 0x104   :  { %v230_v58 = vmul.f32 %v4362_v56, %v115_v15  ;;  %v4363_v54 = vmov %v4357_v48  ;;  %v291_v33 = vadd.f32 %v289_v14, %v285_v6  ;;  %v4364_v45 = vmov %v4358_v21 }
 0x105   :  { %v290_v51 = vmul.f32 %v4363_v54, %v115_v15  ;;  %v350_v9 = vmul.f32 %v4364_v45, %v115_v15  ;;  %v351_v62 = vadd.f32 %v349_v11, %v345_v2  ;;  %v172_v17 = vadd.f32 %v170_v53, %v166_v18 }
 0x106   :  { %v232_v44 = vadd.f32 %v230_v58, %v226_v43  ;;  %v4365_v47 = vmov %v4359_v60  ;;  %v3201_v61 = vadd.f32 %v409_v1, %v405_v12  ;;  %v4366_v32 = vmov %v4360_v39 }
 0x107   :  { %v410_v57 = vmul.f32 %v4365_v47, %v115_v15  ;;  %v292_v16 = vadd.f32 %v290_v51, %v286_v29  ;;  %v352_v19 = vadd.f32 %v350_v9, %v346_v25  ;;  %v470_v24 = vmul.f32 %v4366_v32, %v115_v15 }
 0x108   :  { %v3205_v27 = vadd.f32 %v469_v23, %v465_v37  ;;  %v4367_v10 = vstv %s4220_s27  ;;  %v4369_v46 = vstv %s4221_s17  ;;  %v121_v34 = vsel %vm120_vm0, %v117_v3, %v119_v22  ;;  %s4380_s17 = sld [smem:[#allocation40_spill]] }
 0x109   :  { %v412_v6 = vadd.f32 %v410_v57, %v406_v28  ;;  %v529_v18 = vmul.f32 %v4367_v10, %v3132_v42  ;;  %v4368_v2 = vmov %v4367_v10  ;;  %v589_v41 = vmul.f32 %v4369_v46, %v3132_v42 }
 0x10a   :  { %v530_v43 = vmul.f32 %v4368_v2, %v115_v15  ;;  %v472_v29 = vadd.f32 %v470_v24, %v466_v38  ;;  %v4370_v25 = vmov %v4369_v46  ;;  %v122_v31 = vsel %vm120_vm0, %v119_v22, %v117_v3 }
 0x10b   :  { %v590_v49 = vmul.f32 %v4370_v25, %v115_v15  ;;  %v531_v55 = vadd.f32 %v529_v18, %v525_v13  ;;  %v591_v12 = vadd.f32 %v589_v41, %v585_v52  ;;  %v125_v59 = vsel %vm2900_vm6, %v121_v34, 0.0 }
 0x10c   :  { %v532_v42 = vadd.f32 %v530_v43, %v526_v0  ;;  %v126_v28 = vsel %vm124_vm1, %v122_v31, 0.0  ;;  %v4372_v37 = vstv %s4222_s28  ;;  %v4373_v5 = vstv %s4223_s25 }
 0x10d   :  { %v592_v36 = vadd.f32 %v590_v49, %v586_v63  ;;  %v175_v38 = vmul.f32 %v4372_v37, %v125_v59  ;;  %v235_v50 = vmul.f32 %v4373_v5, %v125_v59  ;;  %v4374_v20 = vmov %v4372_v37 }
 0x10e   :  { %v176_v35 = vmul.f32 %v4374_v20, %v126_v28  ;;  %v4375_v7 = vmov %v4373_v5  ;;  %v4376_v48 = vstv %s2729_s9  ;;  %v4378_v14 = vstv %s2741_s12  ;;  %s4391_s12 = sld [smem:[#allocation42_spill]] }
 0x10f   :  { %v236_v26 = vmul.f32 %v4375_v7, %v126_v28  ;;  %v295_v13 = vmul.f32 %v4376_v48, %v125_v59  ;;  %v4377_v0 = vmov %v4376_v48  ;;  %v177_v52 = vadd.f32 %v175_v38, %v171_v4 }
 0x110   :  { %v296_v40 = vmul.f32 %v4377_v0, %v126_v28  ;;  %v237_v63 = vadd.f32 %v235_v50, %v231_v30  ;;  %v355_v15 = vmul.f32 %v4378_v14, %v125_v59  ;;  %v4379_v21 = vmov %v4378_v14 }
 0x111   :  { %v356_v11 = vmul.f32 %v4379_v21, %v126_v28  ;;  %v178_v60 = vadd.f32 %v176_v35, %v172_v17  ;;  %v238_v1 = vadd.f32 %v236_v26, %v232_v44  ;;  %v297_v39 = vadd.f32 %v295_v13, %v291_v33 }
 0x112   :  { %v298_v23 = vadd.f32 %v296_v40, %v292_v16  ;;  %v4381_v8 = vstv %s4371_s2  ;;  %v4382_v56 = vstv %s2723_s8  ;;  %v357_v54 = vadd.f32 %v355_v15, %v351_v62  ;;  %s4397_s8 = sld [smem:[#allocation46_spill]] }
 0x113   :  { %v181_v53 = vadd.f32 %v4381_v8, %v177_v52  ;;  %v241_v58 = vadd.f32 %v4382_v56, %v237_v63  ;;  %v358_v51 = vadd.f32 %v356_v11, %v352_v19  ;;  %v4383_v45 = vmov %v4381_v8  ;;  %s4411_s2 = sld [smem:[#allocation75_spill]] }
 0x114   :  { %v182_v9 = vadd.f32 %v4383_v45, %v178_v60  ;;  %v4384_v4 = vmov %v4382_v56  ;;  %v4385_v47 = vstv %s2735_s15  ;;  %v4387_v33 = vstv %s4380_s17  ;;  %v703_v45 = vld [vmem:[%s4409_s10 + $0x278] sm:$0xff] }
 0x115   :  { %v242_v30 = vadd.f32 %v4384_v4, %v238_v1  ;;  %v301_v57 = vadd.f32 %v4385_v47, %v297_v39  ;;  %v4386_v22 = vmov %v4385_v47  ;;  %v183_v17 = vmax.f32 %v181_v53, 0.0 }
 0x116   :  { %v302_v3 = vadd.f32 %v4386_v22, %v298_v23  ;;  %v243_v44 = vmax.f32 %v241_v58, 0.0  ;;  %v361_v16 = vadd.f32 %v4387_v33, %v357_v54  ;;  %v4388_v32 = vmov %v4387_v33  ;;  %v718_v33 = vld [vmem:[%s4409_s10 + $0x2f0] sm:$0xff] }
 0x117   :  { %v362_v24 = vadd.f32 %v4388_v32, %v358_v51  ;;  %v184_v62 = vmax.f32 %v182_v9, 0.0  ;;  %v244_v19 = vmax.f32 %v242_v30, 0.0  ;;  %v303_v10 = vmax.f32 %v301_v57, 0.0  ;;  %185 = vst [vmem:[#allocation2 + $0x30] sm:$0x3f] %v183_v17 }
 0x118   :  { %v304_v18 = vmax.f32 %v302_v3, 0.0  ;;  %245 = vst [vmem:[#allocation2 + $0x58] sm:$0x3f] %v243_v44  ;;  %v363_v2 = vmax.f32 %v361_v16, 0.0  ;;  %v4389_v46 = vstv %s2755_s6  ;;  %v4392_v34 = vstv %s2773_s11  ;;  %v750_v16 = vld [vmem:[%s4409_s10 + $0x3f0] sm:$0xff] }
 0x119   :  { %v364_v43 = vmax.f32 %v362_v24, 0.0  ;;  %v415_v41 = vmul.f32 %v4389_v46, %v125_v59  ;;  %v4390_v25 = vmov %v4389_v46  ;;  %186 = vst [vmem:[#allocation2] sm:$0x3f] %v184_v62  ;;  %246 = vst [vmem:[#allocation2 + $0x18] sm:$0x3f] %v244_v19  ;;  %v475_v31 = vmul.f32 %v4392_v34, %v125_v59  ;;  %v702_v24 = vld [vmem:[%s4409_s10 + $0x270] sm:$0xff] }
 0x11a   :  { %v416_v49 = vmul.f32 %v4390_v25, %v126_v28  ;;  %305 = vst [vmem:[#allocation2 + $0x50] sm:$0x3f] %v303_v10  ;;  %306 = vst [vmem:[#allocation2 + $0x68] sm:$0x3f] %v304_v18  ;;  %v4393_v37 = vmov %v4392_v34  ;;  %v4394_v5 = vstv %s2793_s18  ;;  %v4398_v48 = vstv %s4226_s0  ;;  %v734_v62 = vld [vmem:[%s4409_s10 + $0x370] sm:$0xff]  ;;  %v717_v10 = vld [vmem:[%s4409_s10 + $0x2e8] sm:$0xff] }
 0x11b   :  { %v476_v38 = vmul.f32 %v4393_v37, %v126_v28  ;;  %v535_v50 = vmul.f32 %v4394_v5, %v125_v59  ;;  %v4395_v20 = vmov %v4394_v5  ;;  %365 = vst [vmem:[#allocation2 + $0x8] sm:$0x3f] %v363_v2  ;;  %366 = vst [vmem:[#allocation2 + $0x48] sm:$0x3f] %v364_v43  ;;  %v417_v7 = vadd.f32 %v415_v41, %v3201_v61  ;;  %v749_v18 = vld [vmem:[%s4409_s10 + $0x3e8] sm:$0xff]  ;;  %v716_v46 = vld [vmem:[%s4409_s10 + $0x2e0] sm:$0xff] }
 0x11c   :  { %v536_v35 = vmul.f32 %v4395_v20, %v126_v28  ;;  %v418_v26 = vadd.f32 %v416_v49, %v412_v6  ;;  %v595_v13 = vmul.f32 %v4398_v48, %v125_v59  ;;  %v4399_v0 = vmov %v4398_v48  ;;  %v701_v2 = vld [vmem:[%s4409_s10 + $0x268] sm:$0xff]  ;;  %v748_v41 = vld [vmem:[%s4409_s10 + $0x3e0] sm:$0xff]  ;;  %v715_v34 = vld [vmem:[%s4409_s10 + $0x2d8] sm:$0xff] }
 0x11d   :  { %v596_v40 = vmul.f32 %v4399_v0, %v126_v28  ;;  %v477_v52 = vadd.f32 %v475_v31, %v3205_v27  ;;  %v478_v63 = vadd.f32 %v476_v38, %v472_v29  ;;  %v537_v14 = vadd.f32 %v535_v50, %v531_v55  ;;  %v733_v43 = vld [vmem:[%s4409_s10 + $0x368] sm:$0xff]  ;;  %v700_v25 = vld [vmem:[%s4409_s10 + $0x260] sm:$0xff]  ;;  %v747_v31 = vld [vmem:[%s4409_s10 + $0x3d8] sm:$0xff] }
 0x11e   :  { %v538_v15 = vadd.f32 %v536_v35, %v532_v42  ;;  %v4401_v21 = vstv %s4391_s12  ;;  %v597_v39 = vadd.f32 %v595_v13, %v591_v12  ;;  %v4403_v8 = vstv %s4396_s7  ;;  %v735_v12 = vld [vmem:[%s4409_s10 + $0x378] sm:$0xff]  ;;  %v608_v47 = vld [vmem:[#allocation2 + $0x30] sm:$0x3f]  ;;  %v732_v49 = vld [vmem:[%s4409_s10 + $0x360] sm:$0xff] }
 0x11f   :  { %v421_v11 = vadd.f32 %v4401_v21, %v417_v7  ;;  %v4402_v60 = vmov %v4401_v21  ;;  %v598_v23 = vadd.f32 %v596_v40, %v592_v36  ;;  %v481_v61 = vadd.f32 %v4403_v8, %v477_v52  ;;  %v610_v44 = vld [vmem:[#allocation2 + $0x58] sm:$0x3f]  ;;  %v714_v5 = vld [vmem:[%s4409_s10 + $0x2d0] sm:$0xff]  ;;  %v713_v7 = vld [vmem:[%s4409_s10 + $0x2c8] sm:$0xff] }
 0x120   :  { %v422_v1 = vadd.f32 %v4402_v60, %v418_v26  ;;  %v4404_v6 = vmov %v4403_v8  ;;  %v4405_v59 = vstv %s4397_s8  ;;  %v4407_v27 = vstv %s4400_s14  ;;  %v609_v3 = vld [vmem:[#allocation2] sm:$0x3f]  ;;  %v611_v17 = vld [vmem:[#allocation2 + $0x18] sm:$0x3f]  ;;  %v746_v50 = vld [vmem:[%s4409_s10 + $0x3d0] sm:$0xff]  ;;  %s2311_s8 = smov 64  }
 0x121   :  { %v482_v53 = vadd.f32 %v4404_v6, %v478_v63  ;;  %v541_v56 = vadd.f32 %v4405_v59, %v537_v14  ;;  %v4406_v58 = vmov %v4405_v59  ;;  %v423_v54 = vmax.f32 %v421_v11, 0.0  ;;  %948 = vmatprep.mubr.f32.mxu0 %v609_v3  ;;  %1018 = vmatprep.mubr.f32.mxu1 %v611_v17  ;;  %v613_v32 = vld [vmem:[#allocation2 + $0x68] sm:$0x3f]  ;;  %v699_v37 = vld [vmem:[%s4409_s10 + $0x258] sm:$0xff]  ;;  %v698_v20 = vld [vmem:[%s4409_s10 + $0x250] sm:$0xff] }
 0x122   :  { %v542_v28 = vadd.f32 %v4406_v58, %v538_v15  ;;  %v424_v51 = vmax.f32 %v422_v1, 0.0  ;;  %v601_v29 = vadd.f32 %v4407_v27, %v597_v39  ;;  %v4408_v55 = vmov %v4407_v27  ;;  %949 = vmatmul.mubr.f32.vlgmr.msra.gmra.mxu0 %v608_v47  ;;  %1019 = vmatmul.mubr.f32.vlgmr.msra.gmra.mxu1 %v610_v44  ;;  %v615_v19 = vld [vmem:[#allocation2 + $0x48] sm:$0x3f]  ;;  %v731_v38 = vld [vmem:[%s4409_s10 + $0x358] sm:$0xff]  ;;  %v730_v35 = vld [vmem:[%s4409_s10 + $0x350] sm:$0xff] }
 0x123   :  { %v602_v42 = vadd.f32 %v4408_v55, %v598_v23  ;;  %v483_v36 = vmax.f32 %v481_v61, 0.0  ;;  %v484_v9 = vmax.f32 %v482_v53, 0.0  ;;  %v543_v4 = vmax.f32 %v541_v56, 0.0  ;;  %425 = vst [vmem:[#allocation2 + $0x40] sm:$0x3f] %v423_v54  ;;  %1971 = vmatpush3.msra.mxu0 %v703_v45  ;;  %2006 = vmatpush3.msra.mxu1 %v735_v12  ;;  %v745_v26 = vld [vmem:[%s4409_s10 + $0x3c8] sm:$0xff] }
 0x124   :  { %v544_v30 = vmax.f32 %v542_v28, 0.0  ;;  %426 = vst [vmem:[#allocation2 + $0x20] sm:$0x3f] %v424_v51  ;;  %v603_v57 = vmax.f32 %v601_v29, 0.0  ;;  %1972 = vmatprep.subr.mxu0 %v718_v33  ;;  %1088 = vmatprep.mubr.f32.mxu0 %v613_v32  ;;  %v697_v48 = vld [vmem:[%s4409_s10 + $0x248] sm:$0xff]  ;;  %v712_v0 = vld [vmem:[%s4409_s10 + $0x2c0] sm:$0xff] }
 0x125   :  { %v604_v22 = vmax.f32 %v602_v42, 0.0  ;;  %485 = vst [vmem:[#allocation2 + $0x10] sm:$0x3f] %v483_v36  ;;  %486 = vst [vmem:[#allocation2 + $0x38] sm:$0x3f] %v484_v9  ;;  %2007 = vmatprep.subr.mxu1 %v750_v16  ;;  %1158 = vmatprep.mubr.f32.mxu1 %v615_v19  ;;  %v729_v13 = vld [vmem:[%s4409_s10 + $0x348] sm:$0xff] }
 0x126   :  { %545 = vst [vmem:[#allocation2 + $0x60] sm:$0x3f] %v543_v4  ;;  %546 = vst [vmem:[#allocation2 + $0x70] sm:$0x3f] %v544_v30  ;;  %1973 = vmatpush3.msra.mxu0 %v702_v24  ;;  %2008 = vmatpush3.msra.mxu1 %v734_v62  ;;  %v744_v40 = vld [vmem:[%s4409_s10 + $0x3c0] sm:$0xff]  ;;  %v711_v14 = vld [vmem:[%s4409_s10 + $0x2b8] sm:$0xff] }
 0x127   :  { %605 = vst [vmem:[#allocation2 + $0x78] sm:$0x3f] %v603_v57  ;;  %606 = vst [vmem:[#allocation2 + $0x28] sm:$0x3f] %v604_v22  ;;  %1974 = vmatprep.subr.mxu0 %v717_v10  ;;  %2009 = vmatprep.subr.mxu1 %v749_v18  ;;  %v696_v52 = vld [vmem:[%s4409_s10 + $0x240] sm:$0xff]  ;;  %v743_v15 = vld [vmem:[%s4409_s10 + $0x3b8] sm:$0xff] }
 0x128   :  { %1975 = vmatpush3.msra.mxu0 %v701_v2  ;;  %2010 = vmatpush3.msra.mxu1 %v733_v43  ;;  %v728_v63 = vld [vmem:[%s4409_s10 + $0x340] sm:$0xff]  ;;  %v695_v21 = vld [vmem:[%s4409_s10 + $0x238] sm:$0xff]  ;;  %v710_v60 = vld [vmem:[%s4409_s10 + $0x2b0] sm:$0xff]  ;;  %vm1459_vm3 = vcmask 261120   ;;  %vm1797_vm4 = vcmask 259072   ;;  %vm1638_vm6 = vcmask 523264  }
 0x129   :  { %1976 = vmatprep.subr.mxu0 %v716_v46  ;;  %2011 = vmatprep.subr.mxu1 %v748_v41  ;;  %v727_v11 = vld [vmem:[%s4409_s10 + $0x338] sm:$0xff]  ;;  %v742_v1 = vld [vmem:[%s4409_s10 + $0x3b0] sm:$0xff]  ;;  %v709_v8 = vld [vmem:[%s4409_s10 + $0x2a8] sm:$0xff] }
 0x12a   :  { %1977 = vmatpush3.msra.mxu0 %v700_v25  ;;  %2012 = vmatpush3.msra.mxu1 %v732_v49  ;;  %v694_v39 = vld [vmem:[%s4409_s10 + $0x230] sm:$0xff]  ;;  %v741_v61 = vld [vmem:[%s4409_s10 + $0x3a8] sm:$0xff]  ;;  %v708_v59 = vld [vmem:[%s4409_s10 + $0x2a0] sm:$0xff] }
 0x12b   :  { %1978 = vmatprep.subr.mxu0 %v715_v34  ;;  %2013 = vmatprep.subr.mxu1 %v747_v31  ;;  %v726_v23 = vld [vmem:[%s4409_s10 + $0x330] sm:$0xff]  ;;  %v693_v6 = vld [vmem:[%s4409_s10 + $0x228] sm:$0xff]  ;;  %v740_v56 = vld [vmem:[%s4409_s10 + $0x3a0] sm:$0xff] }
 0x12c   :  { %1979 = vmatpush3.msra.mxu0 %v699_v37  ;;  %2014 = vmatpush3.msra.mxu1 %v731_v38  ;;  %v725_v53 = vld [vmem:[%s4409_s10 + $0x328] sm:$0xff]  ;;  %v692_v58 = vld [vmem:[%s4409_s10 + $0x220] sm:$0xff]  ;;  %v707_v54 = vld [vmem:[%s4409_s10 + $0x298] sm:$0xff] }
 0x12d   :  { %1980 = vmatprep.subr.mxu0 %v714_v5  ;;  %2015 = vmatprep.subr.mxu1 %v746_v50  ;;  %v724_v28 = vld [vmem:[%s4409_s10 + $0x320] sm:$0xff]  ;;  %v739_v51 = vld [vmem:[%s4409_s10 + $0x398] sm:$0xff]  ;;  %v706_v55 = vld [vmem:[%s4409_s10 + $0x290] sm:$0xff] }
 0x12e   :  { %1981 = vmatpush3.msra.mxu0 %v698_v20  ;;  %2016 = vmatpush3.msra.mxu1 %v730_v35  ;;  %v691_v27 = vld [vmem:[%s4409_s10 + $0x218] sm:$0xff]  ;;  %v738_v42 = vld [vmem:[%s4409_s10 + $0x390] sm:$0xff]  ;;  %v705_v36 = vld [vmem:[%s4409_s10 + $0x288] sm:$0xff] }
 0x12f   :  { %1982 = vmatprep.subr.mxu0 %v713_v7  ;;  %2017 = vmatprep.subr.mxu1 %v745_v26  ;;  %v723_v29 = vld [vmem:[%s4409_s10 + $0x318] sm:$0xff]  ;;  %v690_v45 = vld [vmem:[%s4409_s10 + $0x210] sm:$0xff]  ;;  %v737_v9 = vld [vmem:[%s4409_s10 + $0x388] sm:$0xff] }
 0x130   :  { %1983 = vmatpush3.msra.mxu0 %v697_v48  ;;  %2018 = vmatpush3.msra.mxu1 %v729_v13  ;;  %v722_v12 = vld [vmem:[%s4409_s10 + $0x310] sm:$0xff]  ;;  %v689_v4 = vld [vmem:[%s4409_s10 + $0x208] sm:$0xff]  ;;  %v704_v47 = vld [vmem:[%s4409_s10 + $0x280] sm:$0xff] }
 0x131   :  { %1984 = vmatprep.subr.mxu0 %v712_v0  ;;  %2019 = vmatprep.subr.mxu1 %v744_v40  ;;  %v721_v30 = vld [vmem:[%s4409_s10 + $0x308] sm:$0xff]  ;;  %v736_v57 = vld [vmem:[%s4409_s10 + $0x380] sm:$0xff]  ;;  %v783_v17 = vld [vmem:[%s4409_s10 + $0x4f8] sm:$0xff] }
 0x132   :  { %1985 = vmatpush3.msra.mxu0 %v696_v52  ;;  %2020 = vmatpush3.msra.mxu1 %v728_v63  ;;  %v688_v22 = vld [vmem:[%s4409_s10 + $0x200] sm:$0xff]  ;;  %v815_v44 = vld [vmem:[%s4409_s10 + $0x5f8] sm:$0xff]  ;;  %v612_v33 = vld [vmem:[#allocation2 + $0x50] sm:$0x3f] }
 0x133   :  { %1986 = vmatprep.subr.mxu0 %v711_v14  ;;  %2021 = vmatprep.subr.mxu1 %v743_v15  ;;  %v720_v3 = vld [vmem:[%s4409_s10 + $0x300] sm:$0xff]  ;;  %v614_v16 = vld [vmem:[#allocation2 + $0x8] sm:$0x3f]  ;;  %v767_v32 = vld [vmem:[%s4409_s10 + $0x478] sm:$0xff] }
 0x134   :  { %1987 = vmatpush3.msra.mxu0 %v695_v21  ;;  %2022 = vmatpush3.msra.mxu1 %v727_v11  ;;  %v799_v24 = vld [vmem:[%s4409_s10 + $0x578] sm:$0xff]  ;;  %v617_v62 = vld [vmem:[#allocation2 + $0x20] sm:$0x3f]  ;;  %v782_v19 = vld [vmem:[%s4409_s10 + $0x4f0] sm:$0xff] }
 0x135   :  { %1988 = vmatprep.subr.mxu0 %v710_v60  ;;  %2023 = vmatprep.subr.mxu1 %v742_v1  ;;  %v814_v10 = vld [vmem:[%s4409_s10 + $0x5f0] sm:$0xff]  ;;  %v619_v18 = vld [vmem:[#allocation2 + $0x38] sm:$0x3f]  ;;  %v781_v46 = vld [vmem:[%s4409_s10 + $0x4e8] sm:$0xff] }
 0x136   :  { %1989 = vmatpush3.msra.mxu0 %v694_v39  ;;  %2024 = vmatpush3.msra.mxu1 %v726_v23  ;;  %v766_v2 = vld [vmem:[%s4409_s10 + $0x470] sm:$0xff]  ;;  %v813_v41 = vld [vmem:[%s4409_s10 + $0x5e8] sm:$0xff]  ;;  %v780_v34 = vld [vmem:[%s4409_s10 + $0x4e0] sm:$0xff] }
 0x137   :  { %1990 = vmatprep.subr.mxu0 %v709_v8  ;;  %2025 = vmatprep.subr.mxu1 %v741_v61  ;;  %v798_v43 = vld [vmem:[%s4409_s10 + $0x570] sm:$0xff]  ;;  %v765_v25 = vld [vmem:[%s4409_s10 + $0x468] sm:$0xff]  ;;  %v812_v31 = vld [vmem:[%s4409_s10 + $0x5e0] sm:$0xff] }
 0x138   :  { %1991 = vmatpush3.msra.mxu0 %v693_v6  ;;  %2026 = vmatpush3.msra.mxu1 %v725_v53  ;;  %v797_v49 = vld [vmem:[%s4409_s10 + $0x568] sm:$0xff]  ;;  %v764_v37 = vld [vmem:[%s4409_s10 + $0x460] sm:$0xff]  ;;  %v779_v5 = vld [vmem:[%s4409_s10 + $0x4d8] sm:$0xff] }
 0x139   :  { %1992 = vmatprep.subr.mxu0 %v708_v59  ;;  %2027 = vmatprep.subr.mxu1 %v740_v56  ;;  %v796_v38 = vld [vmem:[%s4409_s10 + $0x560] sm:$0xff]  ;;  %v811_v50 = vld [vmem:[%s4409_s10 + $0x5d8] sm:$0xff]  ;;  %v778_v7 = vld [vmem:[%s4409_s10 + $0x4d0] sm:$0xff] }
 0x13a   :  { %1993 = vmatpush3.msra.mxu0 %v692_v58  ;;  %2028 = vmatpush3.msra.mxu1 %v724_v28  ;;  %v763_v20 = vld [vmem:[%s4409_s10 + $0x458] sm:$0xff]  ;;  %v810_v26 = vld [vmem:[%s4409_s10 + $0x5d0] sm:$0xff]  ;;  %v777_v0 = vld [vmem:[%s4409_s10 + $0x4c8] sm:$0xff] }
 0x13b   :  { %1994 = vmatprep.subr.mxu0 %v707_v54  ;;  %2029 = vmatprep.subr.mxu1 %v739_v51  ;;  %v795_v35 = vld [vmem:[%s4409_s10 + $0x558] sm:$0xff]  ;;  %v762_v48 = vld [vmem:[%s4409_s10 + $0x450] sm:$0xff]  ;;  %v809_v40 = vld [vmem:[%s4409_s10 + $0x5c8] sm:$0xff] }
 0x13c   :  { %1995 = vmatpush3.msra.mxu0 %v691_v27  ;;  %2030 = vmatpush3.msra.mxu1 %v723_v29  ;;  %v794_v13 = vld [vmem:[%s4409_s10 + $0x550] sm:$0xff]  ;;  %v761_v52 = vld [vmem:[%s4409_s10 + $0x448] sm:$0xff]  ;;  %v776_v14 = vld [vmem:[%s4409_s10 + $0x4c0] sm:$0xff] }
 0x13d   :  { %1996 = vmatprep.subr.mxu0 %v706_v55  ;;  %2031 = vmatprep.subr.mxu1 %v738_v42  ;;  %v793_v63 = vld [vmem:[%s4409_s10 + $0x548] sm:$0xff]  ;;  %v808_v15 = vld [vmem:[%s4409_s10 + $0x5c0] sm:$0xff]  ;;  %v775_v60 = vld [vmem:[%s4409_s10 + $0x4b8] sm:$0xff] }
 0x13e   :  { %1997 = vmatpush3.msra.mxu0 %v690_v45  ;;  %2032 = vmatpush3.msra.mxu1 %v722_v12  ;;  %v760_v21 = vld [vmem:[%s4409_s10 + $0x440] sm:$0xff]  ;;  %v807_v1 = vld [vmem:[%s4409_s10 + $0x5b8] sm:$0xff]  ;;  %v774_v8 = vld [vmem:[%s4409_s10 + $0x4b0] sm:$0xff] }
 0x13f   :  { %1998 = vmatprep.subr.mxu0 %v705_v36  ;;  %2033 = vmatprep.subr.mxu1 %v737_v9  ;;  %v792_v11 = vld [vmem:[%s4409_s10 + $0x540] sm:$0xff]  ;;  %v759_v39 = vld [vmem:[%s4409_s10 + $0x438] sm:$0xff]  ;;  %v806_v61 = vld [vmem:[%s4409_s10 + $0x5b0] sm:$0xff] }
 0x140   :  { %1999 = vmatpush3.msra.mxu0 %v689_v4  ;;  %2034 = vmatpush3.msra.mxu1 %v721_v30  ;;  %v791_v23 = vld [vmem:[%s4409_s10 + $0x538] sm:$0xff]  ;;  %v758_v6 = vld [vmem:[%s4409_s10 + $0x430] sm:$0xff]  ;;  %v773_v59 = vld [vmem:[%s4409_s10 + $0x4a8] sm:$0xff] }
 0x141   :  { %2000 = vmatprep.subr.mxu0 %v704_v47  ;;  %2035 = vmatprep.subr.mxu1 %v736_v57  ;;  %v790_v53 = vld [vmem:[%s4409_s10 + $0x530] sm:$0xff]  ;;  %v805_v56 = vld [vmem:[%s4409_s10 + $0x5a8] sm:$0xff]  ;;  %v772_v54 = vld [vmem:[%s4409_s10 + $0x4a0] sm:$0xff] }
 0x142   :  { %2001 = vmatpush3.msra.mxu0 %v688_v22  ;;  %2036 = vmatpush3.msra.mxu1 %v720_v3  ;;  %v757_v58 = vld [vmem:[%s4409_s10 + $0x428] sm:$0xff]  ;;  %v804_v51 = vld [vmem:[%s4409_s10 + $0x5a0] sm:$0xff]  ;;  %v771_v55 = vld [vmem:[%s4409_s10 + $0x498] sm:$0xff] }
 0x143   :  { %1089 = vmatmul.mubr.f32.vlgmr.msra.gmra.mxu0 %v612_v33  ;;  %1159 = vmatmul.mubr.f32.vlgmr.msra.gmra.mxu1 %v614_v16  ;;  %v789_v28 = vld [vmem:[%s4409_s10 + $0x528] sm:$0xff]  ;;  %v756_v27 = vld [vmem:[%s4409_s10 + $0x420] sm:$0xff]  ;;  %v803_v42 = vld [vmem:[%s4409_s10 + $0x598] sm:$0xff] }
 0x144   :  { %2040 = vmatprep.subr.mxu0 %v783_v17  ;;  %2075 = vmatprep.subr.mxu1 %v815_v44  ;;  %v788_v29 = vld [vmem:[%s4409_s10 + $0x520] sm:$0xff]  ;;  %v755_v45 = vld [vmem:[%s4409_s10 + $0x418] sm:$0xff]  ;;  %v770_v36 = vld [vmem:[%s4409_s10 + $0x490] sm:$0xff] }
 0x145   :  { %2041 = vmatpush3.msra.mxu0 %v767_v32  ;;  %1228 = vmatprep.mubr.f32.mxu0 %v617_v62  ;;  %v787_v12 = vld [vmem:[%s4409_s10 + $0x518] sm:$0xff]  ;;  %v802_v9 = vld [vmem:[%s4409_s10 + $0x590] sm:$0xff]  ;;  %v769_v47 = vld [vmem:[%s4409_s10 + $0x488] sm:$0xff] }
 0x146   :  { %2076 = vmatpush3.msra.mxu1 %v799_v24  ;;  %1298 = vmatprep.mubr.f32.mxu1 %v619_v18  ;;  %v754_v4 = vld [vmem:[%s4409_s10 + $0x410] sm:$0xff]  ;;  %v801_v57 = vld [vmem:[%s4409_s10 + $0x588] sm:$0xff]  ;;  %v768_v17 = vld [vmem:[%s4409_s10 + $0x480] sm:$0xff] }
 0x147   :  { %2042 = vmatprep.subr.mxu0 %v782_v19  ;;  %2077 = vmatprep.subr.mxu1 %v814_v10  ;;  %v786_v30 = vld [vmem:[%s4409_s10 + $0x510] sm:$0xff]  ;;  %v753_v22 = vld [vmem:[%s4409_s10 + $0x408] sm:$0xff]  ;;  %v800_v44 = vld [vmem:[%s4409_s10 + $0x580] sm:$0xff] }
 0x148   :  { %2043 = vmatpush3.msra.mxu0 %v766_v2  ;;  %2078 = vmatpush3.msra.mxu1 %v798_v43  ;;  %v785_v3 = vld [vmem:[%s4409_s10 + $0x508] sm:$0xff]  ;;  %v752_v33 = vld [vmem:[%s4409_s10 + $0x400] sm:$0xff]  ;;  %v847_v32 = vld [vmem:[%s4409_s10 + $0x6f8] sm:$0xff] }
 0x149   :  { %2044 = vmatprep.subr.mxu0 %v781_v46  ;;  %2079 = vmatprep.subr.mxu1 %v813_v41  ;;  %v784_v16 = vld [vmem:[%s4409_s10 + $0x500] sm:$0xff]  ;;  %v879_v24 = vld [vmem:[%s4409_s10 + $0x7f8] sm:$0xff]  ;;  %v618_v19 = vld [vmem:[#allocation2 + $0x10] sm:$0x3f] }
 0x14a   :  { %2045 = vmatpush3.msra.mxu0 %v765_v25  ;;  %2080 = vmatpush3.msra.mxu1 %v797_v49  ;;  %v616_v62 = vld [vmem:[#allocation2 + $0x40] sm:$0x3f]  ;;  %v831_v10 = vld [vmem:[%s4409_s10 + $0x678] sm:$0xff]  ;;  %v621_v2 = vld [vmem:[#allocation2 + $0x70] sm:$0x3f] }
 0x14b   :  { %2046 = vmatprep.subr.mxu0 %v780_v34  ;;  %2081 = vmatprep.subr.mxu1 %v812_v31  ;;  %v863_v18 = vld [vmem:[%s4409_s10 + $0x778] sm:$0xff]  ;;  %v846_v43 = vld [vmem:[%s4409_s10 + $0x6f0] sm:$0xff]  ;;  %v623_v41 = vld [vmem:[#allocation2 + $0x28] sm:$0x3f] }
 0x14c   :  { %2047 = vmatpush3.msra.mxu0 %v764_v37  ;;  %2082 = vmatpush3.msra.mxu1 %v796_v38  ;;  %v878_v46 = vld [vmem:[%s4409_s10 + $0x7f0] sm:$0xff]  ;;  %v845_v34 = vld [vmem:[%s4409_s10 + $0x6e8] sm:$0xff] }
 0x14d   :  { %2048 = vmatprep.subr.mxu0 %v779_v5  ;;  %2083 = vmatprep.subr.mxu1 %v811_v50  ;;  %v830_v25 = vld [vmem:[%s4409_s10 + $0x670] sm:$0xff]  ;;  %v877_v31 = vld [vmem:[%s4409_s10 + $0x7e8] sm:$0xff]  ;;  %v844_v5 = vld [vmem:[%s4409_s10 + $0x6e0] sm:$0xff] }
 0x14e   :  { %2049 = vmatpush3.msra.mxu0 %v763_v20  ;;  %2084 = vmatpush3.msra.mxu1 %v795_v35  ;;  %v862_v49 = vld [vmem:[%s4409_s10 + $0x770] sm:$0xff]  ;;  %v829_v37 = vld [vmem:[%s4409_s10 + $0x668] sm:$0xff]  ;;  %v876_v50 = vld [vmem:[%s4409_s10 + $0x7e0] sm:$0xff] }
 0x14f   :  { %2050 = vmatprep.subr.mxu0 %v778_v7  ;;  %2085 = vmatprep.subr.mxu1 %v810_v26  ;;  %v861_v38 = vld [vmem:[%s4409_s10 + $0x768] sm:$0xff]  ;;  %v828_v20 = vld [vmem:[%s4409_s10 + $0x660] sm:$0xff]  ;;  %v843_v7 = vld [vmem:[%s4409_s10 + $0x6d8] sm:$0xff] }
 0x150   :  { %2051 = vmatpush3.msra.mxu0 %v762_v48  ;;  %2086 = vmatpush3.msra.mxu1 %v794_v13  ;;  %v860_v35 = vld [vmem:[%s4409_s10 + $0x760] sm:$0xff]  ;;  %v875_v26 = vld [vmem:[%s4409_s10 + $0x7d8] sm:$0xff] }
 0x151   :  { %2052 = vmatprep.subr.mxu0 %v777_v0  ;;  %2087 = vmatprep.subr.mxu1 %v809_v40  ;;  %v827_v48 = vld [vmem:[%s4409_s10 + $0x658] sm:$0xff]  ;;  %v842_v0 = vld [vmem:[%s4409_s10 + $0x6d0] sm:$0xff] }
 0x152   :  { %2053 = vmatpush3.msra.mxu0 %v761_v52  ;;  %2088 = vmatpush3.msra.mxu1 %v793_v63  ;;  %v859_v13 = vld [vmem:[%s4409_s10 + $0x758] sm:$0xff]  ;;  %v874_v40 = vld [vmem:[%s4409_s10 + $0x7d0] sm:$0xff] }
 0x153   :  { %2054 = vmatprep.subr.mxu0 %v776_v14  ;;  %2089 = vmatprep.subr.mxu1 %v808_v15  ;;  %v826_v52 = vld [vmem:[%s4409_s10 + $0x650] sm:$0xff]  ;;  %v841_v14 = vld [vmem:[%s4409_s10 + $0x6c8] sm:$0xff] }
 0x154   :  { %2055 = vmatpush3.msra.mxu0 %v760_v21  ;;  %2090 = vmatpush3.msra.mxu1 %v792_v11  ;;  %v858_v63 = vld [vmem:[%s4409_s10 + $0x750] sm:$0xff]  ;;  %v873_v15 = vld [vmem:[%s4409_s10 + $0x7c8] sm:$0xff] }
 0x155   :  { %2056 = vmatprep.subr.mxu0 %v775_v60  ;;  %2091 = vmatprep.subr.mxu1 %v807_v1  ;;  %v825_v21 = vld [vmem:[%s4409_s10 + $0x648] sm:$0xff]  ;;  %v840_v60 = vld [vmem:[%s4409_s10 + $0x6c0] sm:$0xff] }
 0x156   :  { %2057 = vmatpush3.msra.mxu0 %v759_v39  ;;  %2092 = vmatpush3.msra.mxu1 %v791_v23  ;;  %v857_v11 = vld [vmem:[%s4409_s10 + $0x748] sm:$0xff]  ;;  %v872_v1 = vld [vmem:[%s4409_s10 + $0x7c0] sm:$0xff] }
 0x157   :  { %2058 = vmatprep.subr.mxu0 %v774_v8  ;;  %2093 = vmatprep.subr.mxu1 %v806_v61  ;;  %v824_v39 = vld [vmem:[%s4409_s10 + $0x640] sm:$0xff]  ;;  %v839_v8 = vld [vmem:[%s4409_s10 + $0x6b8] sm:$0xff] }
 0x158   :  { %2059 = vmatpush3.msra.mxu0 %v758_v6  ;;  %2094 = vmatpush3.msra.mxu1 %v790_v53  ;;  %v856_v23 = vld [vmem:[%s4409_s10 + $0x740] sm:$0xff]  ;;  %v871_v61 = vld [vmem:[%s4409_s10 + $0x7b8] sm:$0xff] }
 0x159   :  { %2060 = vmatprep.subr.mxu0 %v773_v59  ;;  %2095 = vmatprep.subr.mxu1 %v805_v56  ;;  %v823_v6 = vld [vmem:[%s4409_s10 + $0x638] sm:$0xff]  ;;  %v838_v59 = vld [vmem:[%s4409_s10 + $0x6b0] sm:$0xff] }
 0x15a   :  { %2061 = vmatpush3.msra.mxu0 %v757_v58  ;;  %2096 = vmatpush3.msra.mxu1 %v789_v28  ;;  %v855_v53 = vld [vmem:[%s4409_s10 + $0x738] sm:$0xff]  ;;  %v870_v56 = vld [vmem:[%s4409_s10 + $0x7b0] sm:$0xff] }
 0x15b   :  { %2062 = vmatprep.subr.mxu0 %v772_v54  ;;  %2097 = vmatprep.subr.mxu1 %v804_v51  ;;  %v822_v58 = vld [vmem:[%s4409_s10 + $0x630] sm:$0xff]  ;;  %v837_v54 = vld [vmem:[%s4409_s10 + $0x6a8] sm:$0xff] }
 0x15c   :  { %2063 = vmatpush3.msra.mxu0 %v756_v27  ;;  %2098 = vmatpush3.msra.mxu1 %v788_v29  ;;  %v854_v28 = vld [vmem:[%s4409_s10 + $0x730] sm:$0xff]  ;;  %v869_v51 = vld [vmem:[%s4409_s10 + $0x7a8] sm:$0xff] }
 0x15d   :  { %2064 = vmatprep.subr.mxu0 %v771_v55  ;;  %2099 = vmatprep.subr.mxu1 %v803_v42  ;;  %v821_v27 = vld [vmem:[%s4409_s10 + $0x628] sm:$0xff]  ;;  %v836_v55 = vld [vmem:[%s4409_s10 + $0x6a0] sm:$0xff] }
 0x15e   :  { %2065 = vmatpush3.msra.mxu0 %v755_v45  ;;  %2100 = vmatpush3.msra.mxu1 %v787_v12  ;;  %v853_v29 = vld [vmem:[%s4409_s10 + $0x728] sm:$0xff]  ;;  %v868_v42 = vld [vmem:[%s4409_s10 + $0x7a0] sm:$0xff] }
 0x15f   :  { %2066 = vmatprep.subr.mxu0 %v770_v36  ;;  %2101 = vmatprep.subr.mxu1 %v802_v9  ;;  %v820_v45 = vld [vmem:[%s4409_s10 + $0x620] sm:$0xff]  ;;  %v835_v36 = vld [vmem:[%s4409_s10 + $0x698] sm:$0xff] }
 0x160   :  { %2067 = vmatpush3.msra.mxu0 %v754_v4  ;;  %2102 = vmatpush3.msra.mxu1 %v786_v30  ;;  %v852_v12 = vld [vmem:[%s4409_s10 + $0x720] sm:$0xff]  ;;  %v867_v9 = vld [vmem:[%s4409_s10 + $0x798] sm:$0xff] }
 0x161   :  { %2068 = vmatprep.subr.mxu0 %v769_v47  ;;  %2103 = vmatprep.subr.mxu1 %v801_v57  ;;  %v819_v4 = vld [vmem:[%s4409_s10 + $0x618] sm:$0xff]  ;;  %v834_v47 = vld [vmem:[%s4409_s10 + $0x690] sm:$0xff] }
 0x162   :  { %2069 = vmatpush3.msra.mxu0 %v753_v22  ;;  %2104 = vmatpush3.msra.mxu1 %v785_v3  ;;  %v851_v30 = vld [vmem:[%s4409_s10 + $0x718] sm:$0xff]  ;;  %v866_v57 = vld [vmem:[%s4409_s10 + $0x790] sm:$0xff] }
 0x163   :  { %2070 = vmatprep.subr.mxu0 %v768_v17  ;;  %2105 = vmatprep.subr.mxu1 %v800_v44  ;;  %v818_v22 = vld [vmem:[%s4409_s10 + $0x610] sm:$0xff]  ;;  %v833_v17 = vld [vmem:[%s4409_s10 + $0x688] sm:$0xff] }
 0x164   :  { %2071 = vmatpush3.msra.mxu0 %v752_v33  ;;  %2106 = vmatpush3.msra.mxu1 %v784_v16  ;;  %v850_v3 = vld [vmem:[%s4409_s10 + $0x710] sm:$0xff]  ;;  %v865_v44 = vld [vmem:[%s4409_s10 + $0x788] sm:$0xff] }
 0x165   :  { %1229 = vmatmul.mubr.f32.vlgmr.msra.gmra.mxu0 %v616_v62  ;;  %1299 = vmatmul.mubr.f32.vlgmr.msra.gmra.mxu1 %v618_v19  ;;  %v817_v33 = vld [vmem:[%s4409_s10 + $0x608] sm:$0xff]  ;;  %v816_v62 = vld [vmem:[%s4409_s10 + $0x600] sm:$0xff] }
 0x166   :  { %2110 = vmatprep.subr.mxu0 %v847_v32  ;;  %2145 = vmatprep.subr.mxu1 %v879_v24  ;;  %v849_v16 = vld [vmem:[%s4409_s10 + $0x708] sm:$0xff]  ;;  %v832_v32 = vld [vmem:[%s4409_s10 + $0x680] sm:$0xff] }
 0x167   :  { %2111 = vmatpush3.msra.mxu0 %v831_v10  ;;  %1368 = vmatprep.mubr.f32.mxu0 %v621_v2  ;;  %v864_v24 = vld [vmem:[%s4409_s10 + $0x780] sm:$0xff]  ;;  %v2308_v2 = vmov 0.0  }
 0x168   :  { %2146 = vmatpush3.msra.mxu1 %v863_v18  ;;  %1438 = vmatprep.mubr.f32.mxu1 %v623_v41  ;;  %v848_v19 = vld [vmem:[%s4409_s10 + $0x700] sm:$0xff]  ;;  %v622_v18 = vld [vmem:[#allocation2 + $0x78] sm:$0x3f]  ;;  %1796 = vst [vmem:[%s4410_s5] sm:$0x3f] %v2308_v2  ;;  %v1446_v41 = vld [vmem:[%s4411_s2 + $0x8] sm:$0xff] }
 0x169   :  { %2112 = vmatprep.subr.mxu0 %v846_v43  ;;  %2147 = vmatprep.subr.mxu1 %v878_v46  ;;  %v620_v10 = vld [vmem:[#allocation2 + $0x60] sm:$0x3f]  ;;  %v1448_v43 = vld [vmem:[%s4411_s2 + $0x18] sm:$0xff]  ;;  %v1447_v46 = vld [vmem:[%s4411_s2 + $0x10] sm:$0xff] }
 0x16a   :  { %2113 = vmatpush3.msra.mxu0 %v830_v25  ;;  %2148 = vmatpush3.msra.mxu1 %v862_v49  ;;  %v1445_v25 = vld [vmem:[%s4411_s2] sm:$0xff]  ;;  %v1453_v49 = vld [vmem:[%s4411_s2 + $0x38] sm:$0xff] }
 0x16b   :  { %2114 = vmatprep.subr.mxu0 %v845_v34  ;;  %2149 = vmatprep.subr.mxu1 %v877_v31 }
 0x16c   :  { %2115 = vmatpush3.msra.mxu0 %v829_v37  ;;  %2150 = vmatpush3.msra.mxu1 %v861_v38 }
 0x16d   :  { %2116 = vmatprep.subr.mxu0 %v844_v5  ;;  %2151 = vmatprep.subr.mxu1 %v876_v50  ;;  %v1891_v50 = vld [vmem:[%s4411_s2 + $0xc0] ss:$0 sm:$0xff] }
 0x16e   :  { %2117 = vmatpush3.msra.mxu0 %v828_v20  ;;  %2152 = vmatpush3.msra.mxu1 %v860_v35 }
 0x16f   :  { %2118 = vmatprep.subr.mxu0 %v843_v7  ;;  %2153 = vmatprep.subr.mxu1 %v875_v26 }
 0x170   :  { %2119 = vmatpush3.msra.mxu0 %v827_v48  ;;  %2154 = vmatpush3.msra.mxu1 %v859_v13 }
 0x171   :  { %2120 = vmatprep.subr.mxu0 %v842_v0  ;;  %2155 = vmatprep.subr.mxu1 %v874_v40 }
 0x172   :  { %2121 = vmatpush3.msra.mxu0 %v826_v52  ;;  %2156 = vmatpush3.msra.mxu1 %v858_v63 }
 0x173   :  { %2122 = vmatprep.subr.mxu0 %v841_v14  ;;  %2157 = vmatprep.subr.mxu1 %v873_v15 }
 0x174   :  { %2123 = vmatpush3.msra.mxu0 %v825_v21  ;;  %2158 = vmatpush3.msra.mxu1 %v857_v11 }
 0x175   :  { %2124 = vmatprep.subr.mxu0 %v840_v60  ;;  %2159 = vmatprep.subr.mxu1 %v872_v1 }
 0x176   :  { %2125 = vmatpush3.msra.mxu0 %v824_v39  ;;  %2160 = vmatpush3.msra.mxu1 %v856_v23 }
 0x177   :  { %2126 = vmatprep.subr.mxu0 %v839_v8  ;;  %2161 = vmatprep.subr.mxu1 %v871_v61 }
 0x178   :  { %2127 = vmatpush3.msra.mxu0 %v823_v6  ;;  %2162 = vmatpush3.msra.mxu1 %v855_v53 }
 0x179   :  { %2128 = vmatprep.subr.mxu0 %v838_v59  ;;  %2163 = vmatprep.subr.mxu1 %v870_v56 }
 0x17a   :  { %2129 = vmatpush3.msra.mxu0 %v822_v58  ;;  %2164 = vmatpush3.msra.mxu1 %v854_v28 }
 0x17b   :  { %2130 = vmatprep.subr.mxu0 %v837_v54  ;;  %2165 = vmatprep.subr.mxu1 %v869_v51 }
 0x17c   :  { %2131 = vmatpush3.msra.mxu0 %v821_v27  ;;  %2166 = vmatpush3.msra.mxu1 %v853_v29  ;;  %v1452_v27 = vld [vmem:[%s4411_s2 + $0x30] sm:$0xff]  ;;  %v1451_v29 = vld [vmem:[%s4411_s2 + $0x28] sm:$0xff] }
 0x17d   :  { %2132 = vmatprep.subr.mxu0 %v836_v55  ;;  %2167 = vmatprep.subr.mxu1 %v868_v42  ;;  %v1450_v55 = vld [vmem:[%s4411_s2 + $0x20] sm:$0xff] }
 0x17e   :  { %2133 = vmatpush3.msra.mxu0 %v820_v45  ;;  %2168 = vmatpush3.msra.mxu1 %v852_v12  ;;  %v1892_v42 = vld [vmem:[%s4411_s2 + $0xc1] ss:$0 sm:$0xff] }
 0x17f   :  { %2134 = vmatprep.subr.mxu0 %v835_v36  ;;  %2169 = vmatprep.subr.mxu1 %v867_v9 }
 0x180   :  { %2135 = vmatpush3.msra.mxu0 %v819_v4  ;;  %2170 = vmatpush3.msra.mxu1 %v851_v30  ;;  %v1618_v4 = vld [vmem:[%s4411_s2 + $0x78] sm:$0xff]  ;;  %v1617_v30 = vld [vmem:[%s4411_s2 + $0x70] sm:$0xff] }
 0x181   :  { %2136 = vmatprep.subr.mxu0 %v834_v47  ;;  %2171 = vmatprep.subr.mxu1 %v866_v57  ;;  %v1616_v47 = vld [vmem:[%s4411_s2 + $0x68] sm:$0xff]  ;;  %v1615_v57 = vld [vmem:[%s4411_s2 + $0x60] sm:$0xff] }
 0x182   :  { %2137 = vmatpush3.msra.mxu0 %v818_v22  ;;  %2172 = vmatpush3.msra.mxu1 %v850_v3  ;;  %v1614_v22 = vld [vmem:[%s4411_s2 + $0x58] sm:$0xff]  ;;  %v1613_v3 = vld [vmem:[%s4411_s2 + $0x50] sm:$0xff] }
 0x183   :  { %2138 = vmatprep.subr.mxu0 %v833_v17  ;;  %2173 = vmatprep.subr.mxu1 %v865_v44  ;;  %v1612_v17 = vld [vmem:[%s4411_s2 + $0x48] sm:$0xff]  ;;  %v1611_v44 = vld [vmem:[%s4411_s2 + $0x40] sm:$0xff] }
 0x184   :  { %2139 = vmatpush3.msra.mxu0 %v817_v33  ;;  %2174 = vmatpush3.msra.mxu1 %v849_v16  ;;  %v1627_v33 = vld [vmem:[%s4411_s2 + $0xb8] sm:$0xff]  ;;  %v1626_v16 = vld [vmem:[%s4411_s2 + $0xb0] sm:$0xff] }
 0x185   :  { %2140 = vmatprep.subr.mxu0 %v832_v32  ;;  %2175 = vmatprep.subr.mxu1 %v864_v24  ;;  %v1625_v32 = vld [vmem:[%s4411_s2 + $0xa8] sm:$0xff]  ;;  %v1624_v24 = vld [vmem:[%s4411_s2 + $0xa0] sm:$0xff] }
 0x186   :  { %2141 = vmatpush3.msra.mxu0 %v816_v62  ;;  %2176 = vmatpush3.msra.mxu1 %v848_v19  ;;  %v1623_v62 = vld [vmem:[%s4411_s2 + $0x98] sm:$0xff]  ;;  %v1894_v19 = vld [vmem:[%s4411_s2 + $0xc2] ss:$0 sm:$0xff] }
 0x187   :  { %1369 = vmatmul.mubr.f32.vlgmr.msra.gmra.mxu0 %v620_v10  ;;  %1439 = vmatmul.mubr.f32.vlgmr.msra.gmra.mxu1 %v622_v18 }
 0x188   :  { %2208 = vmatprep.subr.mxu0 %v2308_v2  ;;  %2219 = vmatprep.subr.mxu1 %v2308_v2 }
 0x189   :  { %2209 = vmatpush3.msra.mxu0 %v1448_v43  ;;  %2216 = vmatprep.mubr.msk.f32.mxu0 %vm2309_vm2, %v2308_v2 }
 0x18a   :  { %2210 = vmatprep.subr.mxu0 %v2308_v2  ;;  %2227 = vmatprep.mubr.msk.f32.mxu1 %vm2309_vm2, %v2308_v2 }
 0x18b   :  { %2211 = vmatpush3.msra.mxu0 %v1447_v46  ;;  %2220 = vmatpush3.msra.mxu1 %v1453_v49  ;;  %v1621_v49 = vld [vmem:[%s4411_s2 + $0x88] sm:$0xff] }
 0x18c   :  { %2212 = vmatprep.subr.mxu0 %v2308_v2  ;;  %2221 = vmatprep.subr.mxu1 %v2308_v2 }
 0x18d   :  { %2213 = vmatpush3.msra.mxu0 %v1446_v41  ;;  %2222 = vmatpush3.msra.mxu1 %v1452_v27 }
 0x18e   :  { %2214 = vmatprep.subr.mxu0 %v2308_v2  ;;  %2223 = vmatprep.subr.mxu1 %v2308_v2 }
 0x18f   :  { %2215 = vmatpush3.msra.mxu0 %v1445_v25  ;;  %2224 = vmatpush3.msra.mxu1 %v1451_v29  ;;  %v1622_v25 = vld [vmem:[%s4411_s2 + $0x90] sm:$0xff] }
 0x190   :  { %2230 = vmatprep.subr.mxu0 %v2308_v2  ;;  %2225 = vmatprep.subr.mxu1 %v2308_v2 }
 0x191   :  { %2226 = vmatpush3.msra.mxu1 %v1450_v55 }
 0x192   :  { %2249 = vmatprep.subr.mxu1 %v2308_v2 }
 0x1e2   :  { %v1932_v34 = vpop.f32.mrf.mxu0  ;;  %v1967_v37 = vpop.f32.mrf.mxu1 }
 0x1e4   :  { %v1933_v31 = vpop.f32.mrf.mxu0  ;;  %v1968_v20 = vpop.f32.mrf.mxu1 }
 0x1e5   :  { %v1934_v5 = vadd.f32 %v1933_v31, %v1932_v34  ;;  %v1969_v13 = vadd.f32 %v1968_v20, %v1967_v37  ;;  %v1620_v34 = vld [vmem:[%s4411_s2 + $0x80] sm:$0xff] }
 0x1e6   :  { %v1896_v31 = vld [vmem:[%s4411_s2 + $0xc3] ss:$0 sm:$0xff]  ;;  %v1898_v20 = vld [vmem:[%s4411_s2 + $0xc4] ss:$0 sm:$0xff] }
 0x1e7   :  { %v951_v7 = vadd.f32 %v1934_v5, %v1891_v50 }
 0x1e9   :  { %v1021_v40 = vadd.f32 %v1969_v13, %v951_v7 }
 0x203   :  { %v2002_v38 = vpop.f32.mrf.mxu0  ;;  %v2037_v26 = vpop.f32.mrf.mxu1 }
 0x205   :  { %v2003_v35 = vpop.f32.mrf.mxu0  ;;  %v2038_v52 = vpop.f32.mrf.mxu1 }
 0x206   :  { %v2004_v0 = vadd.f32 %v2003_v35, %v2002_v38  ;;  %v2039_v21 = vadd.f32 %v2038_v52, %v2037_v26 }
 0x208   :  { %v1091_v14 = vadd.f32 %v2004_v0, %v1021_v40 }
 0x20a   :  { %v1161_v60 = vadd.f32 %v2039_v21, %v1091_v14 }
 0x225   :  { %v2072_v48 = vpop.f32.mrf.mxu0  ;;  %v2107_v15 = vpop.f32.mrf.mxu1 }
 0x227   :  { %v2073_v63 = vpop.f32.mrf.mxu0  ;;  %v2108_v1 = vpop.f32.mrf.mxu1 }
 0x228   :  { %v2074_v11 = vadd.f32 %v2073_v63, %v2072_v48  ;;  %v2109_v61 = vadd.f32 %v2108_v1, %v2107_v15 }
 0x22a   :  { %v1231_v39 = vadd.f32 %v2074_v11, %v1161_v60 }
 0x22c   :  { %v1301_v59 = vadd.f32 %v2109_v61, %v1231_v39 }
 0x247   :  { %v2142_v23 = vpop.f32.mrf.mxu0  ;;  %v2177_v8 = vpop.f32.mrf.mxu1 }
 0x249   :  { %v2143_v6 = vpop.f32.mrf.mxu0  ;;  %v2178_v53 = vpop.f32.mrf.mxu1 }
 0x24a   :  { %v2144_v56 = vadd.f32 %v2143_v6, %v2142_v23  ;;  %v2179_v28 = vadd.f32 %v2178_v53, %v2177_v8 }
 0x24c   :  { %v1371_v58 = vadd.f32 %v2144_v56, %v1301_v59 }
 0x24e   :  { %v1441_v54 = vadd.f32 %v2179_v28, %v1371_v58 }
 0x250   :  { %v3896_v51 = vmax.f32 %v1441_v54, 0.0 }
 0x252   :  { %2217 = vmatmul.mubr.msk.f32.vlgmr.msra.gmra.mxu0 %vm1459_vm3, %v3896_v51  ;;  %1798 = vst.msk [vmem:[%s4410_s5] sm:$0x3f] %vm1797_vm4, %v3896_v51 }
 0x253   :  { %2246 = vmatprep.mubr.msk.f32.mxu0 %vm2309_vm2, %v2308_v2  ;;  %2231 = vmatpush3.msra.mxu0 %v1618_v4 }
 0x254   :  { %2232 = vmatprep.subr.mxu0 %v2308_v2 }
 0x255   :  { %2233 = vmatpush3.msra.mxu0 %v1617_v30 }
 0x256   :  { %2234 = vmatprep.subr.mxu0 %v2308_v2 }
 0x257   :  { %2235 = vmatpush3.msra.mxu0 %v1616_v47 }
 0x258   :  { %2236 = vmatprep.subr.mxu0 %v2308_v2 }
 0x259   :  { %2237 = vmatpush3.msra.mxu0 %v1615_v57 }
 0x25a   :  { %2238 = vmatprep.subr.mxu0 %v2308_v2 }
 0x25b   :  { %2239 = vmatpush3.msra.mxu0 %v1614_v22 }
 0x25c   :  { %2240 = vmatprep.subr.mxu0 %v2308_v2 }
 0x25d   :  { %2241 = vmatpush3.msra.mxu0 %v1613_v3 }
 0x25e   :  { %2242 = vmatprep.subr.mxu0 %v2308_v2 }
 0x25f   :  { %2243 = vmatpush3.msra.mxu0 %v1612_v17 }
 0x260   :  { %2244 = vmatprep.subr.mxu0 %v2308_v2 }
 0x261   :  { %2245 = vmatpush3.msra.mxu0 %v1611_v44 }
 0x312   :  { %v1529_v45 = vpop.f32.mrf.mxu0 }
 0x313   :  { %v1530_v12 = vadd.f32 %v1892_v42, %v1529_v45 }
 0x314   :  { %v2218_v36 = vpop.f32.mrf.mxu0 }
 0x315   :  { %v1533_v9 = vmax.f32 %v1530_v12, 0.0 }
 0x317   :  { %2228 = vmatmul.mubr.msk.f32.vlgmr.msra.gmra.mxu1 %vm1459_vm3, %v1533_v9 }
 0x318   :  { %2265 = vmatprep.mubr.msk.f32.mxu1 %vm2309_vm2, %v2308_v2  ;;  %2250 = vmatpush3.msra.mxu1 %v1627_v33 }
 0x319   :  { %2251 = vmatprep.subr.mxu1 %v2308_v2 }
 0x31a   :  { %2252 = vmatpush3.msra.mxu1 %v1626_v16 }
 0x31b   :  { %2253 = vmatprep.subr.mxu1 %v2308_v2 }
 0x31c   :  { %2254 = vmatpush3.msra.mxu1 %v1625_v32 }
 0x31d   :  { %2255 = vmatprep.subr.mxu1 %v2308_v2 }
 0x31e   :  { %2256 = vmatpush3.msra.mxu1 %v1624_v24 }
 0x31f   :  { %2257 = vmatprep.subr.mxu1 %v2308_v2 }
 0x320   :  { %2258 = vmatpush3.msra.mxu1 %v1623_v62 }
 0x321   :  { %2259 = vmatprep.subr.mxu1 %v2308_v2 }
 0x322   :  { %2260 = vmatpush3.msra.mxu1 %v1622_v25 }
 0x323   :  { %2261 = vmatprep.subr.mxu1 %v2308_v2 }
 0x324   :  { %2262 = vmatpush3.msra.mxu1 %v1621_v49 }
 0x325   :  { %2263 = vmatprep.subr.mxu1 %v2308_v2 }
 0x326   :  { %2264 = vmatpush3.msra.mxu1 %v1620_v34 }
 0x3d7   :  { %v1607_v10 = vpop.f32.mrf.mxu1 }
 0x3d8   :  { %v1608_v18 = vadd.f32 %v1894_v19, %v1607_v10 }
 0x3d9   :  { %v2229_v43 = vpop.f32.mrf.mxu1 }
 0x3da   :  { %1630 = vrot.lane.b32.xlu0 %v1608_v18, %s2310_s30 }
 0x44c   :  { %v1631_v46 = vpop.permute.xlu0 %1630 }
 0x44d   :  { %v1633_v41 = vsel %vm1459_vm3, %v3896_v51, %v1631_v46  ;;  %1800 = vst.msk [vmem:[%s4410_s5] sm:$0x3f] %vm1799_vm5, %v1631_v46 }
 0x44e   :  { %2247 = vmatmul.mubr.msk.f32.vlgmr.msra.gmra.mxu0 %vm1638_vm6, %v1633_v41 }
 0x50e   :  { %v1708_v37 = vpop.f32.mrf.mxu0 }
 0x50f   :  { %v1709_v38 = vadd.f32 %v1896_v31, %v1708_v37 }
 0x510   :  { %v2248_v5 = vpop.f32.mrf.mxu0 }
 0x511   :  { %v1712_v50 = vmax.f32 %v1709_v38, 0.0 }
 0x513   :  { %2266 = vmatmul.mubr.msk.f32.vlgmr.msra.gmra.mxu1 %vm1638_vm6, %v1712_v50 }
 0x5d3   :  { %v1786_v35 = vpop.f32.mrf.mxu1 }
 0x5d4   :  { %v1787_v7 = vadd.f32 %v1898_v20, %v1786_v35 }
 0x5d5   :  { %v2267_v26 = vpop.f32.mrf.mxu1 }
 0x5d6   :  { %v1790_v48 = vsub.f32 0.0, %v1787_v7 }
 0x5d8   :  { %v1791_v2 = vmul.f32 1.442695, %v1790_v48 }
 0x5da   :  { %2281 = vpow2.f32 %v1791_v2 }
 0x5e7   :  { %v2282_v13 = vpop.eup %2281 }
 0x5e8   :  { %v1793_v0 = vadd.f32 1.0, %v2282_v13 }
 0x5ea   :  { %2283 = vrcp.f32 %v1793_v0 }
 0x5f7   :  { %v2284_v40 = vpop.eup %2283 }
 0x5f8   :  { %1802 = vrot.lane.b32.xlu1 %v2284_v40, %s2311_s8 }
 0x66a   :  { %v1803_v52 = vpop.permute.xlu1 %1802 }
 0x66b   :  { %1806 = vst.msk [vmem:[%s4410_s5] sm:$0x3f] %vm1805_vm7, %v1803_v52 }
 0x66c   :  { %1811 = vsyncpa [#allocation4], 1 }

</bundles_post_ra>
